<compile_context>
chip_gen: v7x
topology: tpu7x:2x2x1
jax: 0.10.0
libtpu: 0.0.40
codegen_flags: <defaults>
</compile_context>

<pallas_src>
from functools import partial

import numpy as np
import jax
import jax.numpy as jnp
from jax.experimental import pallas as pl
from jax.experimental.pallas import tpu as pltpu


def bilstm_fc_kernel(gxf_ref,          # [T*Bp, 4H]  fwd gate pre-activations (x@Wih+b), time-major
                     gxb_ref,          # [T*Bp, 4H]  bwd gate pre-activations
                     whh_f_ref,        # [H, 4H]     fwd recurrent weight (gate-permuted)
                     whh_b_ref,        # [H, 4H]     bwd recurrent weight (gate-permuted)
                     wfc_ref,          # [2H, Vp]    FC weight (lane-padded)
                     bfc_ref,          # [1, Vp]     FC bias   (lane-padded, -1e30 on pad cols)
                     out_ref,          # [T*Bp, Vp]  log-probs
                     *, T, Bp, H):
    whh_f = whh_f_ref[...]
    whh_b = whh_b_ref[...]

    def cell(gx_t, h, c, whh):
        # Gate order was permuted at param-prep time to (i, f, o, g):
        # sigmoid covers the first 3H contiguous lanes, tanh only the last H.
        gates = gx_t + jnp.dot(h, whh, preferred_element_type=jnp.float32)
        sg = jax.nn.sigmoid(gates[:, :3 * H])
        g_g = jnp.tanh(gates[:, 3 * H:])
        i_g = sg[:, 0 * H:1 * H]
        f_g = sg[:, 1 * H:2 * H]
        o_g = sg[:, 2 * H:3 * H]
        c_new = f_g * c + i_g * g_g
        h_new = o_g * jnp.tanh(c_new)
        return h_new, c_new

    hf = jnp.zeros((Bp, H), jnp.float32)
    cf = jnp.zeros((Bp, H), jnp.float32)
    hb = jnp.zeros((Bp, H), jnp.float32)
    cb = jnp.zeros((Bp, H), jnp.float32)

    hf_list = [None] * T
    hb_list = [None] * T

    # Interleaved fwd/bwd recurrence, fully unrolled (T small & static): two
    # independent dependency chains -> the two h@W_hh matmuls overlap.
    for t in range(T):
        tb = T - 1 - t
        hf, cf = cell(gxf_ref[t * Bp:(t + 1) * Bp, :], hf, cf, whh_f)
        hf_list[t] = hf
        hb, cb = cell(gxb_ref[tb * Bp:(tb + 1) * Bp, :], hb, cb, whh_b)
        hb_list[tb] = hb

    # h values stay in registers (no scratch round-trip); one FC dot.
    hf_all = jnp.concatenate(hf_list, axis=0)                # [T*Bp, H]
    hb_all = jnp.concatenate(hb_list, axis=0)                # [T*Bp, H]
    hcat = jnp.concatenate([hf_all, hb_all], axis=-1)        # [T*Bp, 2H]

    logits = (jnp.dot(hcat, wfc_ref[...], preferred_element_type=jnp.float32)
              + bfc_ref[...])                                # [T*Bp, Vp]
    m = jnp.max(logits, axis=-1, keepdims=True)
    s = logits - m
    lse = jnp.log(jnp.sum(jnp.exp(s), axis=-1, keepdims=True))
    out_ref[...] = s - lse                                   # single lane-dense store


def autocorrect_forward(token_ids, params):
    """token_ids: int32 [B, T].  Returns log-probs [B, T, V] (matches PyTorch)."""
    emb = params["embedding"]                # [V, E], row 0 is zeros (padding_idx=0)
    B, T = token_ids.shape
    H = params["whh_f"].shape[0]
    V = params["wfc"].shape[1]

    # Pad batch to a sublane-dense multiple of 8; padded rows use token 0
    # (zero embedding row) and are dropped after the kernel.
    Bp = ((B + 7) // 8) * 8
    ids = jnp.zeros((Bp, T), jnp.int32).at[:B, :].set(token_ids)

    def permute_gates(w):
        # PyTorch gate order (i, f, g, o) -> (i, f, o, g) along the last dim.
        i, f, g, o = jnp.split(w, 4, axis=-1)
        return jnp.concatenate([i, f, o, g], axis=-1)

    hp = jax.lax.Precision.HIGHEST
    # Fold the input projection + bias into the embedding table (one-time, V=30).
    emb_gx_f = (jnp.dot(emb, permute_gates(params["wih_f"]), precision=hp)
                + permute_gates(params["b_f"]))              # [V, 4H]
    emb_gx_b = (jnp.dot(emb, permute_gates(params["wih_b"]), precision=hp)
                + permute_gates(params["b_b"]))              # [V, 4H]

    # Time-major gather of the pre-projected gates -> lane-dense 2-D slabs.
    gxf = jnp.take(emb_gx_f, ids.T, axis=0).reshape(T * Bp, 4 * H).astype(jnp.float32)
    gxb = jnp.take(emb_gx_b, ids.T, axis=0).reshape(T * Bp, 4 * H).astype(jnp.float32)

    whh_f = permute_gates(params["whh_f"]).astype(jnp.float32)
    whh_b = permute_gates(params["whh_b"]).astype(jnp.float32)

    # Pad the vocab/lane dim to a full 128-lane tile.  Padded columns: zero
    # weights, bias -1e30 -> exp underflows to exactly 0 in the softmax sum.
    Vp = ((V + 127) // 128) * 128
    wfc_p = jnp.zeros((2 * H, Vp), jnp.float32).at[:, :V].set(params["wfc"])
    bfc_p = jnp.full((1, Vp), -1e30, jnp.float32).at[:, :V].set(params["bfc"])

    vmem_spec = pl.BlockSpec(memory_space=pltpu.MemorySpace.VMEM)
    out_2d = pl.pallas_call(
        partial(bilstm_fc_kernel, T=T, Bp=Bp, H=H),
        out_shape=jax.ShapeDtypeStruct((T * Bp, Vp), jnp.float32),
        in_specs=[vmem_spec] * 6,
        out_specs=vmem_spec,
    )(gxf, gxb, whh_f, whh_b, wfc_p, bfc_p)

    # Back to PyTorch layout [B, T, V]; drop batch / vocab padding (wrapper-side
    # layout plumbing is free for XLA).
    out = out_2d.reshape(T, Bp, Vp)
    return jnp.transpose(out, (1, 0, 2))[:B, :, :V]


def reference_forward(token_ids, params):
    """Pure-JAX reference with identical semantics, for validation."""
    emb = jnp.take(params["embedding"], token_ids, axis=0)   # [B, T, E]
    B, T, E = emb.shape
    H = params["whh_f"].shape[0]

    def run_dir(wih, whh, b, reverse):
        h = jnp.zeros((B, H), jnp.float32)
        c = jnp.zeros((B, H), jnp.float32)
        hs = [None] * T
        order = range(T - 1, -1, -1) if reverse else range(T)
        for t in order:
            gates = emb[:, t, :] @ wih + h @ whh + b
            i_g = jax.nn.sigmoid(gates[:, 0 * H:1 * H])
            f_g = jax.nn.sigmoid(gates[:, 1 * H:2 * H])
            g_g = jnp.tanh(gates[:, 2 * H:3 * H])
            o_g = jax.nn.sigmoid(gates[:, 3 * H:4 * H])
            c = f_g * c + i_g * g_g
            h = o_g * jnp.tanh(c)
            hs[t] = h
        return jnp.stack(hs, axis=1)  # [B, T, H]

    hf = run_dir(params["wih_f"], params["whh_f"], params["b_f"], reverse=False)
    hb = run_dir(params["wih_b"], params["whh_b"], params["b_b"], reverse=True)
    hcat = jnp.concatenate([hf, hb], axis=-1)                 # [B, T, 2H]
    logits = hcat @ params["wfc"] + params["bfc"]             # [B, T, V]
    return jax.nn.log_softmax(logits, axis=-1)


def init_params(key, vocab_size, embedding_dim, lstm_units):
    V, E, H = vocab_size, embedding_dim, lstm_units
    ks = jax.random.split(key, 10)
    k = 1.0 / np.sqrt(H)

    emb = jax.random.normal(ks[0], (V, E), jnp.float32)
    emb = emb.at[0].set(0.0)  # padding_idx=0 -> zero row

    def u(kk, shape):
        return jax.random.uniform(kk, shape, jnp.float32, minval=-k, maxval=k)

    params = {
        "embedding": emb,
        # forward direction (PyTorch weight_ih_l0 / weight_hh_l0, pre-transposed)
        "wih_f": u(ks[1], (E, 4 * H)),
        "whh_f": u(ks[2], (H, 4 * H)),
        "b_f": u(ks[3], (1, 4 * H)),   # = b_ih + b_hh folded together
        # backward direction (weight_ih_l0_reverse / weight_hh_l0_reverse)
        "wih_b": u(ks[4], (E, 4 * H)),
        "whh_b": u(ks[5], (H, 4 * H)),
        "b_b": u(ks[6], (1, 4 * H)),
        # fc: PyTorch Linear(2H, V), weight pre-transposed to [2H, V]
        "wfc": u(ks[7], (2 * H, V)),
        "bfc": u(ks[8], (1, V)),
    }
    return params


if __name__ == "__main__":
    # Small, module-consistent sizes.
    vocab_size = 30        # e.g. lowercase letters + a few specials
    embedding_dim = 16
    lstm_units = 32
    batch = 2
    seq_len = 8
    # dropout_rate is irrelevant in eval mode (identity).

    key = jax.random.PRNGKey(0)
    k_param, k_data = jax.random.split(key)
    params = init_params(k_param, vocab_size, embedding_dim, lstm_units)
    token_ids = jax.random.randint(k_data, (batch, seq_len), 0, vocab_size, jnp.int32)

    out = autocorrect_forward(token_ids, params)
    out = jax.block_until_ready(out)

    ref = jax.block_until_ready(reference_forward(token_ids, params))
    assert out.shape == (batch, seq_len, vocab_size)
    np.testing.assert_allclose(np.asarray(out), np.asarray(ref), atol=1e-4, rtol=1e-4)

    print("KERNEL_OK")
</pallas_src>

<mosaic_0001>
module attributes {stable_mosaic.version = 11 : i64} {
  func.func @bilstm_fc_kernel(%arg0: memref<64x128xf32, #tpu.memory_space<vmem>>, %arg1: memref<64x128xf32, #tpu.memory_space<vmem>>, %arg2: memref<32x128xf32, #tpu.memory_space<vmem>>, %arg3: memref<32x128xf32, #tpu.memory_space<vmem>>, %arg4: memref<64x128xf32, #tpu.memory_space<vmem>>, %arg5: memref<1x128xf32, #tpu.memory_space<vmem>>, %arg6: memref<64x128xf32, #tpu.memory_space<vmem>>) attributes {dimension_semantics = [], scalar_prefetch = 0 : i64, scratch_operands = 0 : i64, tpu.core_type = #tpu.core_type<tc>} {
    %c0 = arith.constant 0 : index
    %c0_0 = arith.constant 0 : index
    %0 = vector.load %arg2[%c0, %c0_0] : memref<32x128xf32, #tpu.memory_space<vmem>>, vector<32x128xf32>
    %c0_1 = arith.constant 0 : index
    %c0_2 = arith.constant 0 : index
    %1 = vector.load %arg3[%c0_1, %c0_2] : memref<32x128xf32, #tpu.memory_space<vmem>>, vector<32x128xf32>
    %cst = arith.constant 0.000000e+00 : f32
    %2 = vector.broadcast %cst : f32 to vector<8x32xf32>
    %cst_3 = arith.constant 0.000000e+00 : f32
    %3 = vector.broadcast %cst_3 : f32 to vector<8x32xf32>
    %cst_4 = arith.constant 0.000000e+00 : f32
    %4 = vector.broadcast %cst_4 : f32 to vector<8x32xf32>
    %cst_5 = arith.constant 0.000000e+00 : f32
    %5 = vector.broadcast %cst_5 : f32 to vector<8x32xf32>
    %c0_6 = arith.constant 0 : index
    %c0_7 = arith.constant 0 : index
    %6 = vector.load %arg0[%c0_6, %c0_7] : memref<64x128xf32, #tpu.memory_space<vmem>>, vector<8x128xf32>
    %cst_8 = arith.constant dense<0.000000e+00> : vector<8x128xf32>
    %7 = tpu.matmul %2, %0, %cst_8 {dimension_numbers = #tpu.dot_dimension_numbers<[1], [0], [0], [1], [0, 0, 1, 1], [], []>} : vector<8x32xf32>, vector<32x128xf32>, vector<8x128xf32> -> vector<8x128xf32>
    %8 = arith.addf %6, %7 : vector<8x128xf32>
    %9 = vector.extract_strided_slice %8 {offsets = [0, 0], sizes = [8, 96], strides = [1, 1]} : vector<8x128xf32> to vector<8x96xf32>
    %10 = arith.negf %9 : vector<8x96xf32>
    %11 = math.exp %10 : vector<8x96xf32>
    %cst_9 = arith.constant 1.000000e+00 : f32
    %12 = vector.broadcast %cst_9 : f32 to vector<8x96xf32>
    %13 = arith.addf %12, %11 : vector<8x96xf32>
    %14 = arith.divf %12, %13 : vector<8x96xf32>
    %15 = vector.extract_strided_slice %8 {offsets = [0, 96], sizes = [8, 32], strides = [1, 1]} : vector<8x128xf32> to vector<8x32xf32>
    %16 = math.tanh %15 : vector<8x32xf32>
    %17 = vector.extract_strided_slice %14 {offsets = [0, 0], sizes = [8, 32], strides = [1, 1]} : vector<8x96xf32> to vector<8x32xf32>
    %18 = vector.extract_strided_slice %14 {offsets = [0, 32], sizes = [8, 32], strides = [1, 1]} : vector<8x96xf32> to vector<8x32xf32>
    %19 = vector.extract_strided_slice %14 {offsets = [0, 64], sizes = [8, 32], strides = [1, 1]} : vector<8x96xf32> to vector<8x32xf32>
    %20 = arith.mulf %18, %3 : vector<8x32xf32>
    %21 = arith.mulf %17, %16 : vector<8x32xf32>
    %22 = arith.addf %20, %21 : vector<8x32xf32>
    %23 = math.tanh %22 : vector<8x32xf32>
    %24 = arith.mulf %19, %23 : vector<8x32xf32>
    %c56 = arith.constant 56 : index
    %c0_10 = arith.constant 0 : index
    %25 = vector.load %arg1[%c56, %c0_10] : memref<64x128xf32, #tpu.memory_space<vmem>>, vector<8x128xf32>
    %cst_11 = arith.constant dense<0.000000e+00> : vector<8x128xf32>
    %26 = tpu.matmul %4, %1, %cst_11 {dimension_numbers = #tpu.dot_dimension_numbers<[1], [0], [0], [1], [0, 0, 1, 1], [], []>} : vector<8x32xf32>, vector<32x128xf32>, vector<8x128xf32> -> vector<8x128xf32>
    %27 = arith.addf %25, %26 : vector<8x128xf32>
    %28 = vector.extract_strided_slice %27 {offsets = [0, 0], sizes = [8, 96], strides = [1, 1]} : vector<8x128xf32> to vector<8x96xf32>
    %29 = arith.negf %28 : vector<8x96xf32>
    %30 = math.exp %29 : vector<8x96xf32>
    %cst_12 = arith.constant 1.000000e+00 : f32
    %31 = vector.broadcast %cst_12 : f32 to vector<8x96xf32>
    %32 = arith.addf %31, %30 : vector<8x96xf32>
    %33 = arith.divf %31, %32 : vector<8x96xf32>
    %34 = vector.extract_strided_slice %27 {offsets = [0, 96], sizes = [8, 32], strides = [1, 1]} : vector<8x128xf32> to vector<8x32xf32>
    %35 = math.tanh %34 : vector<8x32xf32>
    %36 = vector.extract_strided_slice %33 {offsets = [0, 0], sizes = [8, 32], strides = [1, 1]} : vector<8x96xf32> to vector<8x32xf32>
    %37 = vector.extract_strided_slice %33 {offsets = [0, 32], sizes = [8, 32], strides = [1, 1]} : vector<8x96xf32> to vector<8x32xf32>
    %38 = vector.extract_strided_slice %33 {offsets = [0, 64], sizes = [8, 32], strides = [1, 1]} : vector<8x96xf32> to vector<8x32xf32>
    %39 = arith.mulf %37, %5 : vector<8x32xf32>
    %40 = arith.mulf %36, %35 : vector<8x32xf32>
    %41 = arith.addf %39, %40 : vector<8x32xf32>
    %42 = math.tanh %41 : vector<8x32xf32>
    %43 = arith.mulf %38, %42 : vector<8x32xf32>
    %c8 = arith.constant 8 : index
    %c0_13 = arith.constant 0 : index
    %44 = vector.load %arg0[%c8, %c0_13] : memref<64x128xf32, #tpu.memory_space<vmem>>, vector<8x128xf32>
    %cst_14 = arith.constant dense<0.000000e+00> : vector<8x128xf32>
    %45 = tpu.matmul %24, %0, %cst_14 {dimension_numbers = #tpu.dot_dimension_numbers<[1], [0], [0], [1], [0, 0, 1, 1], [], []>} : vector<8x32xf32>, vector<32x128xf32>, vector<8x128xf32> -> vector<8x128xf32>
    %46 = arith.addf %44, %45 : vector<8x128xf32>
    %47 = vector.extract_strided_slice %46 {offsets = [0, 0], sizes = [8, 96], strides = [1, 1]} : vector<8x128xf32> to vector<8x96xf32>
    %48 = arith.negf %47 : vector<8x96xf32>
    %49 = math.exp %48 : vector<8x96xf32>
    %cst_15 = arith.constant 1.000000e+00 : f32
    %50 = vector.broadcast %cst_15 : f32 to vector<8x96xf32>
    %51 = arith.addf %50, %49 : vector<8x96xf32>
    %52 = arith.divf %50, %51 : vector<8x96xf32>
    %53 = vector.extract_strided_slice %46 {offsets = [0, 96], sizes = [8, 32], strides = [1, 1]} : vector<8x128xf32> to vector<8x32xf32>
    %54 = math.tanh %53 : vector<8x32xf32>
    %55 = vector.extract_strided_slice %52 {offsets = [0, 0], sizes = [8, 32], strides = [1, 1]} : vector<8x96xf32> to vector<8x32xf32>
    %56 = vector.extract_strided_slice %52 {offsets = [0, 32], sizes = [8, 32], strides = [1, 1]} : vector<8x96xf32> to vector<8x32xf32>
    %57 = vector.extract_strided_slice %52 {offsets = [0, 64], sizes = [8, 32], strides = [1, 1]} : vector<8x96xf32> to vector<8x32xf32>
    %58 = arith.mulf %56, %22 : vector<8x32xf32>
    %59 = arith.mulf %55, %54 : vector<8x32xf32>
    %60 = arith.addf %58, %59 : vector<8x32xf32>
    %61 = math.tanh %60 : vector<8x32xf32>
    %62 = arith.mulf %57, %61 : vector<8x32xf32>
    %c48 = arith.constant 48 : index
    %c0_16 = arith.constant 0 : index
    %63 = vector.load %arg1[%c48, %c0_16] : memref<64x128xf32, #tpu.memory_space<vmem>>, vector<8x128xf32>
    %cst_17 = arith.constant dense<0.000000e+00> : vector<8x128xf32>
    %64 = tpu.matmul %43, %1, %cst_17 {dimension_numbers = #tpu.dot_dimension_numbers<[1], [0], [0], [1], [0, 0, 1, 1], [], []>} : vector<8x32xf32>, vector<32x128xf32>, vector<8x128xf32> -> vector<8x128xf32>
    %65 = arith.addf %63, %64 : vector<8x128xf32>
    %66 = vector.extract_strided_slice %65 {offsets = [0, 0], sizes = [8, 96], strides = [1, 1]} : vector<8x128xf32> to vector<8x96xf32>
    %67 = arith.negf %66 : vector<8x96xf32>
    %68 = math.exp %67 : vector<8x96xf32>
    %cst_18 = arith.constant 1.000000e+00 : f32
    %69 = vector.broadcast %cst_18 : f32 to vector<8x96xf32>
    %70 = arith.addf %69, %68 : vector<8x96xf32>
    %71 = arith.divf %69, %70 : vector<8x96xf32>
    %72 = vector.extract_strided_slice %65 {offsets = [0, 96], sizes = [8, 32], strides = [1, 1]} : vector<8x128xf32> to vector<8x32xf32>
    %73 = math.tanh %72 : vector<8x32xf32>
    %74 = vector.extract_strided_slice %71 {offsets = [0, 0], sizes = [8, 32], strides = [1, 1]} : vector<8x96xf32> to vector<8x32xf32>
    %75 = vector.extract_strided_slice %71 {offsets = [0, 32], sizes = [8, 32], strides = [1, 1]} : vector<8x96xf32> to vector<8x32xf32>
    %76 = vector.extract_strided_slice %71 {offsets = [0, 64], sizes = [8, 32], strides = [1, 1]} : vector<8x96xf32> to vector<8x32xf32>
    %77 = arith.mulf %75, %41 : vector<8x32xf32>
    %78 = arith.mulf %74, %73 : vector<8x32xf32>
    %79 = arith.addf %77, %78 : vector<8x32xf32>
    %80 = math.tanh %79 : vector<8x32xf32>
    %81 = arith.mulf %76, %80 : vector<8x32xf32>
    %c16 = arith.constant 16 : index
    %c0_19 = arith.constant 0 : index
    %82 = vector.load %arg0[%c16, %c0_19] : memref<64x128xf32, #tpu.memory_space<vmem>>, vector<8x128xf32>
    %cst_20 = arith.constant dense<0.000000e+00> : vector<8x128xf32>
    %83 = tpu.matmul %62, %0, %cst_20 {dimension_numbers = #tpu.dot_dimension_numbers<[1], [0], [0], [1], [0, 0, 1, 1], [], []>} : vector<8x32xf32>, vector<32x128xf32>, vector<8x128xf32> -> vector<8x128xf32>
    %84 = arith.addf %82, %83 : vector<8x128xf32>
    %85 = vector.extract_strided_slice %84 {offsets = [0, 0], sizes = [8, 96], strides = [1, 1]} : vector<8x128xf32> to vector<8x96xf32>
    %86 = arith.negf %85 : vector<8x96xf32>
    %87 = math.exp %86 : vector<8x96xf32>
    %cst_21 = arith.constant 1.000000e+00 : f32
    %88 = vector.broadcast %cst_21 : f32 to vector<8x96xf32>
    %89 = arith.addf %88, %87 : vector<8x96xf32>
    %90 = arith.divf %88, %89 : vector<8x96xf32>
    %91 = vector.extract_strided_slice %84 {offsets = [0, 96], sizes = [8, 32], strides = [1, 1]} : vector<8x128xf32> to vector<8x32xf32>
    %92 = math.tanh %91 : vector<8x32xf32>
    %93 = vector.extract_strided_slice %90 {offsets = [0, 0], sizes = [8, 32], strides = [1, 1]} : vector<8x96xf32> to vector<8x32xf32>
    %94 = vector.extract_strided_slice %90 {offsets = [0, 32], sizes = [8, 32], strides = [1, 1]} : vector<8x96xf32> to vector<8x32xf32>
    %95 = vector.extract_strided_slice %90 {offsets = [0, 64], sizes = [8, 32], strides = [1, 1]} : vector<8x96xf32> to vector<8x32xf32>
    %96 = arith.mulf %94, %60 : vector<8x32xf32>
    %97 = arith.mulf %93, %92 : vector<8x32xf32>
    %98 = arith.addf %96, %97 : vector<8x32xf32>
    %99 = math.tanh %98 : vector<8x32xf32>
    %100 = arith.mulf %95, %99 : vector<8x32xf32>
    %c40 = arith.constant 40 : index
    %c0_22 = arith.constant 0 : index
    %101 = vector.load %arg1[%c40, %c0_22] : memref<64x128xf32, #tpu.memory_space<vmem>>, vector<8x128xf32>
    %cst_23 = arith.constant dense<0.000000e+00> : vector<8x128xf32>
    %102 = tpu.matmul %81, %1, %cst_23 {dimension_numbers = #tpu.dot_dimension_numbers<[1], [0], [0], [1], [0, 0, 1, 1], [], []>} : vector<8x32xf32>, vector<32x128xf32>, vector<8x128xf32> -> vector<8x128xf32>
    %103 = arith.addf %101, %102 : vector<8x128xf32>
    %104 = vector.extract_strided_slice %103 {offsets = [0, 0], sizes = [8, 96], strides = [1, 1]} : vector<8x128xf32> to vector<8x96xf32>
    %105 = arith.negf %104 : vector<8x96xf32>
    %106 = math.exp %105 : vector<8x96xf32>
    %cst_24 = arith.constant 1.000000e+00 : f32
    %107 = vector.broadcast %cst_24 : f32 to vector<8x96xf32>
    %108 = arith.addf %107, %106 : vector<8x96xf32>
    %109 = arith.divf %107, %108 : vector<8x96xf32>
    %110 = vector.extract_strided_slice %103 {offsets = [0, 96], sizes = [8, 32], strides = [1, 1]} : vector<8x128xf32> to vector<8x32xf32>
    %111 = math.tanh %110 : vector<8x32xf32>
    %112 = vector.extract_strided_slice %109 {offsets = [0, 0], sizes = [8, 32], strides = [1, 1]} : vector<8x96xf32> to vector<8x32xf32>
    %113 = vector.extract_strided_slice %109 {offsets = [0, 32], sizes = [8, 32], strides = [1, 1]} : vector<8x96xf32> to vector<8x32xf32>
    %114 = vector.extract_strided_slice %109 {offsets = [0, 64], sizes = [8, 32], strides = [1, 1]} : vector<8x96xf32> to vector<8x32xf32>
    %115 = arith.mulf %113, %79 : vector<8x32xf32>
    %116 = arith.mulf %112, %111 : vector<8x32xf32>
    %117 = arith.addf %115, %116 : vector<8x32xf32>
    %118 = math.tanh %117 : vector<8x32xf32>
    %119 = arith.mulf %114, %118 : vector<8x32xf32>
    %c24 = arith.constant 24 : index
    %c0_25 = arith.constant 0 : index
    %120 = vector.load %arg0[%c24, %c0_25] : memref<64x128xf32, #tpu.memory_space<vmem>>, vector<8x128xf32>
    %cst_26 = arith.constant dense<0.000000e+00> : vector<8x128xf32>
    %121 = tpu.matmul %100, %0, %cst_26 {dimension_numbers = #tpu.dot_dimension_numbers<[1], [0], [0], [1], [0, 0, 1, 1], [], []>} : vector<8x32xf32>, vector<32x128xf32>, vector<8x128xf32> -> vector<8x128xf32>
    %122 = arith.addf %120, %121 : vector<8x128xf32>
    %123 = vector.extract_strided_slice %122 {offsets = [0, 0], sizes = [8, 96], strides = [1, 1]} : vector<8x128xf32> to vector<8x96xf32>
    %124 = arith.negf %123 : vector<8x96xf32>
    %125 = math.exp %124 : vector<8x96xf32>
    %cst_27 = arith.constant 1.000000e+00 : f32
    %126 = vector.broadcast %cst_27 : f32 to vector<8x96xf32>
    %127 = arith.addf %126, %125 : vector<8x96xf32>
    %128 = arith.divf %126, %127 : vector<8x96xf32>
    %129 = vector.extract_strided_slice %122 {offsets = [0, 96], sizes = [8, 32], strides = [1, 1]} : vector<8x128xf32> to vector<8x32xf32>
    %130 = math.tanh %129 : vector<8x32xf32>
    %131 = vector.extract_strided_slice %128 {offsets = [0, 0], sizes = [8, 32], strides = [1, 1]} : vector<8x96xf32> to vector<8x32xf32>
    %132 = vector.extract_strided_slice %128 {offsets = [0, 32], sizes = [8, 32], strides = [1, 1]} : vector<8x96xf32> to vector<8x32xf32>
    %133 = vector.extract_strided_slice %128 {offsets = [0, 64], sizes = [8, 32], strides = [1, 1]} : vector<8x96xf32> to vector<8x32xf32>
    %134 = arith.mulf %132, %98 : vector<8x32xf32>
    %135 = arith.mulf %131, %130 : vector<8x32xf32>
    %136 = arith.addf %134, %135 : vector<8x32xf32>
    %137 = math.tanh %136 : vector<8x32xf32>
    %138 = arith.mulf %133, %137 : vector<8x32xf32>
    %c32 = arith.constant 32 : index
    %c0_28 = arith.constant 0 : index
    %139 = vector.load %arg1[%c32, %c0_28] : memref<64x128xf32, #tpu.memory_space<vmem>>, vector<8x128xf32>
    %cst_29 = arith.constant dense<0.000000e+00> : vector<8x128xf32>
    %140 = tpu.matmul %119, %1, %cst_29 {dimension_numbers = #tpu.dot_dimension_numbers<[1], [0], [0], [1], [0, 0, 1, 1], [], []>} : vector<8x32xf32>, vector<32x128xf32>, vector<8x128xf32> -> vector<8x128xf32>
    %141 = arith.addf %139, %140 : vector<8x128xf32>
    %142 = vector.extract_strided_slice %141 {offsets = [0, 0], sizes = [8, 96], strides = [1, 1]} : vector<8x128xf32> to vector<8x96xf32>
    %143 = arith.negf %142 : vector<8x96xf32>
    %144 = math.exp %143 : vector<8x96xf32>
    %cst_30 = arith.constant 1.000000e+00 : f32
    %145 = vector.broadcast %cst_30 : f32 to vector<8x96xf32>
    %146 = arith.addf %145, %144 : vector<8x96xf32>
    %147 = arith.divf %145, %146 : vector<8x96xf32>
    %148 = vector.extract_strided_slice %141 {offsets = [0, 96], sizes = [8, 32], strides = [1, 1]} : vector<8x128xf32> to vector<8x32xf32>
    %149 = math.tanh %148 : vector<8x32xf32>
    %150 = vector.extract_strided_slice %147 {offsets = [0, 0], sizes = [8, 32], strides = [1, 1]} : vector<8x96xf32> to vector<8x32xf32>
    %151 = vector.extract_strided_slice %147 {offsets = [0, 32], sizes = [8, 32], strides = [1, 1]} : vector<8x96xf32> to vector<8x32xf32>
    %152 = vector.extract_strided_slice %147 {offsets = [0, 64], sizes = [8, 32], strides = [1, 1]} : vector<8x96xf32> to vector<8x32xf32>
    %153 = arith.mulf %151, %117 : vector<8x32xf32>
    %154 = arith.mulf %150, %149 : vector<8x32xf32>
    %155 = arith.addf %153, %154 : vector<8x32xf32>
    %156 = math.tanh %155 : vector<8x32xf32>
    %157 = arith.mulf %152, %156 : vector<8x32xf32>
    %c32_31 = arith.constant 32 : index
    %c0_32 = arith.constant 0 : index
    %158 = vector.load %arg0[%c32_31, %c0_32] : memref<64x128xf32, #tpu.memory_space<vmem>>, vector<8x128xf32>
    %cst_33 = arith.constant dense<0.000000e+00> : vector<8x128xf32>
    %159 = tpu.matmul %138, %0, %cst_33 {dimension_numbers = #tpu.dot_dimension_numbers<[1], [0], [0], [1], [0, 0, 1, 1], [], []>} : vector<8x32xf32>, vector<32x128xf32>, vector<8x128xf32> -> vector<8x128xf32>
    %160 = arith.addf %158, %159 : vector<8x128xf32>
    %161 = vector.extract_strided_slice %160 {offsets = [0, 0], sizes = [8, 96], strides = [1, 1]} : vector<8x128xf32> to vector<8x96xf32>
    %162 = arith.negf %161 : vector<8x96xf32>
    %163 = math.exp %162 : vector<8x96xf32>
    %cst_34 = arith.constant 1.000000e+00 : f32
    %164 = vector.broadcast %cst_34 : f32 to vector<8x96xf32>
    %165 = arith.addf %164, %163 : vector<8x96xf32>
    %166 = arith.divf %164, %165 : vector<8x96xf32>
    %167 = vector.extract_strided_slice %160 {offsets = [0, 96], sizes = [8, 32], strides = [1, 1]} : vector<8x128xf32> to vector<8x32xf32>
    %168 = math.tanh %167 : vector<8x32xf32>
    %169 = vector.extract_strided_slice %166 {offsets = [0, 0], sizes = [8, 32], strides = [1, 1]} : vector<8x96xf32> to vector<8x32xf32>
    %170 = vector.extract_strided_slice %166 {offsets = [0, 32], sizes = [8, 32], strides = [1, 1]} : vector<8x96xf32> to vector<8x32xf32>
    %171 = vector.extract_strided_slice %166 {offsets = [0, 64], sizes = [8, 32], strides = [1, 1]} : vector<8x96xf32> to vector<8x32xf32>
    %172 = arith.mulf %170, %136 : vector<8x32xf32>
    %173 = arith.mulf %169, %168 : vector<8x32xf32>
    %174 = arith.addf %172, %173 : vector<8x32xf32>
    %175 = math.tanh %174 : vector<8x32xf32>
    %176 = arith.mulf %171, %175 : vector<8x32xf32>
    %c24_35 = arith.constant 24 : index
    %c0_36 = arith.constant 0 : index
    %177 = vector.load %arg1[%c24_35, %c0_36] : memref<64x128xf32, #tpu.memory_space<vmem>>, vector<8x128xf32>
    %cst_37 = arith.constant dense<0.000000e+00> : vector<8x128xf32>
    %178 = tpu.matmul %157, %1, %cst_37 {dimension_numbers = #tpu.dot_dimension_numbers<[1], [0], [0], [1], [0, 0, 1, 1], [], []>} : vector<8x32xf32>, vector<32x128xf32>, vector<8x128xf32> -> vector<8x128xf32>
    %179 = arith.addf %177, %178 : vector<8x128xf32>
    %180 = vector.extract_strided_slice %179 {offsets = [0, 0], sizes = [8, 96], strides = [1, 1]} : vector<8x128xf32> to vector<8x96xf32>
    %181 = arith.negf %180 : vector<8x96xf32>
    %182 = math.exp %181 : vector<8x96xf32>
    %cst_38 = arith.constant 1.000000e+00 : f32
    %183 = vector.broadcast %cst_38 : f32 to vector<8x96xf32>
    %184 = arith.addf %183, %182 : vector<8x96xf32>
    %185 = arith.divf %183, %184 : vector<8x96xf32>
    %186 = vector.extract_strided_slice %179 {offsets = [0, 96], sizes = [8, 32], strides = [1, 1]} : vector<8x128xf32> to vector<8x32xf32>
    %187 = math.tanh %186 : vector<8x32xf32>
    %188 = vector.extract_strided_slice %185 {offsets = [0, 0], sizes = [8, 32], strides = [1, 1]} : vector<8x96xf32> to vector<8x32xf32>
    %189 = vector.extract_strided_slice %185 {offsets = [0, 32], sizes = [8, 32], strides = [1, 1]} : vector<8x96xf32> to vector<8x32xf32>
    %190 = vector.extract_strided_slice %185 {offsets = [0, 64], sizes = [8, 32], strides = [1, 1]} : vector<8x96xf32> to vector<8x32xf32>
    %191 = arith.mulf %189, %155 : vector<8x32xf32>
    %192 = arith.mulf %188, %187 : vector<8x32xf32>
    %193 = arith.addf %191, %192 : vector<8x32xf32>
    %194 = math.tanh %193 : vector<8x32xf32>
    %195 = arith.mulf %190, %194 : vector<8x32xf32>
    %c40_39 = arith.constant 40 : index
    %c0_40 = arith.constant 0 : index
    %196 = vector.load %arg0[%c40_39, %c0_40] : memref<64x128xf32, #tpu.memory_space<vmem>>, vector<8x128xf32>
    %cst_41 = arith.constant dense<0.000000e+00> : vector<8x128xf32>
    %197 = tpu.matmul %176, %0, %cst_41 {dimension_numbers = #tpu.dot_dimension_numbers<[1], [0], [0], [1], [0, 0, 1, 1], [], []>} : vector<8x32xf32>, vector<32x128xf32>, vector<8x128xf32> -> vector<8x128xf32>
    %198 = arith.addf %196, %197 : vector<8x128xf32>
    %199 = vector.extract_strided_slice %198 {offsets = [0, 0], sizes = [8, 96], strides = [1, 1]} : vector<8x128xf32> to vector<8x96xf32>
    %200 = arith.negf %199 : vector<8x96xf32>
    %201 = math.exp %200 : vector<8x96xf32>
    %cst_42 = arith.constant 1.000000e+00 : f32
    %202 = vector.broadcast %cst_42 : f32 to vector<8x96xf32>
    %203 = arith.addf %202, %201 : vector<8x96xf32>
    %204 = arith.divf %202, %203 : vector<8x96xf32>
    %205 = vector.extract_strided_slice %198 {offsets = [0, 96], sizes = [8, 32], strides = [1, 1]} : vector<8x128xf32> to vector<8x32xf32>
    %206 = math.tanh %205 : vector<8x32xf32>
    %207 = vector.extract_strided_slice %204 {offsets = [0, 0], sizes = [8, 32], strides = [1, 1]} : vector<8x96xf32> to vector<8x32xf32>
    %208 = vector.extract_strided_slice %204 {offsets = [0, 32], sizes = [8, 32], strides = [1, 1]} : vector<8x96xf32> to vector<8x32xf32>
    %209 = vector.extract_strided_slice %204 {offsets = [0, 64], sizes = [8, 32], strides = [1, 1]} : vector<8x96xf32> to vector<8x32xf32>
    %210 = arith.mulf %208, %174 : vector<8x32xf32>
    %211 = arith.mulf %207, %206 : vector<8x32xf32>
    %212 = arith.addf %210, %211 : vector<8x32xf32>
    %213 = math.tanh %212 : vector<8x32xf32>
    %214 = arith.mulf %209, %213 : vector<8x32xf32>
    %c16_43 = arith.constant 16 : index
    %c0_44 = arith.constant 0 : index
    %215 = vector.load %arg1[%c16_43, %c0_44] : memref<64x128xf32, #tpu.memory_space<vmem>>, vector<8x128xf32>
    %cst_45 = arith.constant dense<0.000000e+00> : vector<8x128xf32>
    %216 = tpu.matmul %195, %1, %cst_45 {dimension_numbers = #tpu.dot_dimension_numbers<[1], [0], [0], [1], [0, 0, 1, 1], [], []>} : vector<8x32xf32>, vector<32x128xf32>, vector<8x128xf32> -> vector<8x128xf32>
    %217 = arith.addf %215, %216 : vector<8x128xf32>
    %218 = vector.extract_strided_slice %217 {offsets = [0, 0], sizes = [8, 96], strides = [1, 1]} : vector<8x128xf32> to vector<8x96xf32>
    %219 = arith.negf %218 : vector<8x96xf32>
    %220 = math.exp %219 : vector<8x96xf32>
    %cst_46 = arith.constant 1.000000e+00 : f32
    %221 = vector.broadcast %cst_46 : f32 to vector<8x96xf32>
    %222 = arith.addf %221, %220 : vector<8x96xf32>
    %223 = arith.divf %221, %222 : vector<8x96xf32>
    %224 = vector.extract_strided_slice %217 {offsets = [0, 96], sizes = [8, 32], strides = [1, 1]} : vector<8x128xf32> to vector<8x32xf32>
    %225 = math.tanh %224 : vector<8x32xf32>
    %226 = vector.extract_strided_slice %223 {offsets = [0, 0], sizes = [8, 32], strides = [1, 1]} : vector<8x96xf32> to vector<8x32xf32>
    %227 = vector.extract_strided_slice %223 {offsets = [0, 32], sizes = [8, 32], strides = [1, 1]} : vector<8x96xf32> to vector<8x32xf32>
    %228 = vector.extract_strided_slice %223 {offsets = [0, 64], sizes = [8, 32], strides = [1, 1]} : vector<8x96xf32> to vector<8x32xf32>
    %229 = arith.mulf %227, %193 : vector<8x32xf32>
    %230 = arith.mulf %226, %225 : vector<8x32xf32>
    %231 = arith.addf %229, %230 : vector<8x32xf32>
    %232 = math.tanh %231 : vector<8x32xf32>
    %233 = arith.mulf %228, %232 : vector<8x32xf32>
    %c48_47 = arith.constant 48 : index
    %c0_48 = arith.constant 0 : index
    %234 = vector.load %arg0[%c48_47, %c0_48] : memref<64x128xf32, #tpu.memory_space<vmem>>, vector<8x128xf32>
    %cst_49 = arith.constant dense<0.000000e+00> : vector<8x128xf32>
    %235 = tpu.matmul %214, %0, %cst_49 {dimension_numbers = #tpu.dot_dimension_numbers<[1], [0], [0], [1], [0, 0, 1, 1], [], []>} : vector<8x32xf32>, vector<32x128xf32>, vector<8x128xf32> -> vector<8x128xf32>
    %236 = arith.addf %234, %235 : vector<8x128xf32>
    %237 = vector.extract_strided_slice %236 {offsets = [0, 0], sizes = [8, 96], strides = [1, 1]} : vector<8x128xf32> to vector<8x96xf32>
    %238 = arith.negf %237 : vector<8x96xf32>
    %239 = math.exp %238 : vector<8x96xf32>
    %cst_50 = arith.constant 1.000000e+00 : f32
    %240 = vector.broadcast %cst_50 : f32 to vector<8x96xf32>
    %241 = arith.addf %240, %239 : vector<8x96xf32>
    %242 = arith.divf %240, %241 : vector<8x96xf32>
    %243 = vector.extract_strided_slice %236 {offsets = [0, 96], sizes = [8, 32], strides = [1, 1]} : vector<8x128xf32> to vector<8x32xf32>
    %244 = math.tanh %243 : vector<8x32xf32>
    %245 = vector.extract_strided_slice %242 {offsets = [0, 0], sizes = [8, 32], strides = [1, 1]} : vector<8x96xf32> to vector<8x32xf32>
    %246 = vector.extract_strided_slice %242 {offsets = [0, 32], sizes = [8, 32], strides = [1, 1]} : vector<8x96xf32> to vector<8x32xf32>
    %247 = vector.extract_strided_slice %242 {offsets = [0, 64], sizes = [8, 32], strides = [1, 1]} : vector<8x96xf32> to vector<8x32xf32>
    %248 = arith.mulf %246, %212 : vector<8x32xf32>
    %249 = arith.mulf %245, %244 : vector<8x32xf32>
    %250 = arith.addf %248, %249 : vector<8x32xf32>
    %251 = math.tanh %250 : vector<8x32xf32>
    %252 = arith.mulf %247, %251 : vector<8x32xf32>
    %c8_51 = arith.constant 8 : index
    %c0_52 = arith.constant 0 : index
    %253 = vector.load %arg1[%c8_51, %c0_52] : memref<64x128xf32, #tpu.memory_space<vmem>>, vector<8x128xf32>
    %cst_53 = arith.constant dense<0.000000e+00> : vector<8x128xf32>
    %254 = tpu.matmul %233, %1, %cst_53 {dimension_numbers = #tpu.dot_dimension_numbers<[1], [0], [0], [1], [0, 0, 1, 1], [], []>} : vector<8x32xf32>, vector<32x128xf32>, vector<8x128xf32> -> vector<8x128xf32>
    %255 = arith.addf %253, %254 : vector<8x128xf32>
    %256 = vector.extract_strided_slice %255 {offsets = [0, 0], sizes = [8, 96], strides = [1, 1]} : vector<8x128xf32> to vector<8x96xf32>
    %257 = arith.negf %256 : vector<8x96xf32>
    %258 = math.exp %257 : vector<8x96xf32>
    %cst_54 = arith.constant 1.000000e+00 : f32
    %259 = vector.broadcast %cst_54 : f32 to vector<8x96xf32>
    %260 = arith.addf %259, %258 : vector<8x96xf32>
    %261 = arith.divf %259, %260 : vector<8x96xf32>
    %262 = vector.extract_strided_slice %255 {offsets = [0, 96], sizes = [8, 32], strides = [1, 1]} : vector<8x128xf32> to vector<8x32xf32>
    %263 = math.tanh %262 : vector<8x32xf32>
    %264 = vector.extract_strided_slice %261 {offsets = [0, 0], sizes = [8, 32], strides = [1, 1]} : vector<8x96xf32> to vector<8x32xf32>
    %265 = vector.extract_strided_slice %261 {offsets = [0, 32], sizes = [8, 32], strides = [1, 1]} : vector<8x96xf32> to vector<8x32xf32>
    %266 = vector.extract_strided_slice %261 {offsets = [0, 64], sizes = [8, 32], strides = [1, 1]} : vector<8x96xf32> to vector<8x32xf32>
    %267 = arith.mulf %265, %231 : vector<8x32xf32>
    %268 = arith.mulf %264, %263 : vector<8x32xf32>
    %269 = arith.addf %267, %268 : vector<8x32xf32>
    %270 = math.tanh %269 : vector<8x32xf32>
    %271 = arith.mulf %266, %270 : vector<8x32xf32>
    %c56_55 = arith.constant 56 : index
    %c0_56 = arith.constant 0 : index
    %272 = vector.load %arg0[%c56_55, %c0_56] : memref<64x128xf32, #tpu.memory_space<vmem>>, vector<8x128xf32>
    %cst_57 = arith.constant dense<0.000000e+00> : vector<8x128xf32>
    %273 = tpu.matmul %252, %0, %cst_57 {dimension_numbers = #tpu.dot_dimension_numbers<[1], [0], [0], [1], [0, 0, 1, 1], [], []>} : vector<8x32xf32>, vector<32x128xf32>, vector<8x128xf32> -> vector<8x128xf32>
    %274 = arith.addf %272, %273 : vector<8x128xf32>
    %275 = vector.extract_strided_slice %274 {offsets = [0, 0], sizes = [8, 96], strides = [1, 1]} : vector<8x128xf32> to vector<8x96xf32>
    %276 = arith.negf %275 : vector<8x96xf32>
    %277 = math.exp %276 : vector<8x96xf32>
    %cst_58 = arith.constant 1.000000e+00 : f32
    %278 = vector.broadcast %cst_58 : f32 to vector<8x96xf32>
    %279 = arith.addf %278, %277 : vector<8x96xf32>
    %280 = arith.divf %278, %279 : vector<8x96xf32>
    %281 = vector.extract_strided_slice %274 {offsets = [0, 96], sizes = [8, 32], strides = [1, 1]} : vector<8x128xf32> to vector<8x32xf32>
    %282 = math.tanh %281 : vector<8x32xf32>
    %283 = vector.extract_strided_slice %280 {offsets = [0, 0], sizes = [8, 32], strides = [1, 1]} : vector<8x96xf32> to vector<8x32xf32>
    %284 = vector.extract_strided_slice %280 {offsets = [0, 32], sizes = [8, 32], strides = [1, 1]} : vector<8x96xf32> to vector<8x32xf32>
    %285 = vector.extract_strided_slice %280 {offsets = [0, 64], sizes = [8, 32], strides = [1, 1]} : vector<8x96xf32> to vector<8x32xf32>
    %286 = arith.mulf %284, %250 : vector<8x32xf32>
    %287 = arith.mulf %283, %282 : vector<8x32xf32>
    %288 = arith.addf %286, %287 : vector<8x32xf32>
    %289 = math.tanh %288 : vector<8x32xf32>
    %290 = arith.mulf %285, %289 : vector<8x32xf32>
    %c0_59 = arith.constant 0 : index
    %c0_60 = arith.constant 0 : index
    %291 = vector.load %arg1[%c0_59, %c0_60] : memref<64x128xf32, #tpu.memory_space<vmem>>, vector<8x128xf32>
    %cst_61 = arith.constant dense<0.000000e+00> : vector<8x128xf32>
    %292 = tpu.matmul %271, %1, %cst_61 {dimension_numbers = #tpu.dot_dimension_numbers<[1], [0], [0], [1], [0, 0, 1, 1], [], []>} : vector<8x32xf32>, vector<32x128xf32>, vector<8x128xf32> -> vector<8x128xf32>
    %293 = arith.addf %291, %292 : vector<8x128xf32>
    %294 = vector.extract_strided_slice %293 {offsets = [0, 0], sizes = [8, 96], strides = [1, 1]} : vector<8x128xf32> to vector<8x96xf32>
    %295 = arith.negf %294 : vector<8x96xf32>
    %296 = math.exp %295 : vector<8x96xf32>
    %cst_62 = arith.constant 1.000000e+00 : f32
    %297 = vector.broadcast %cst_62 : f32 to vector<8x96xf32>
    %298 = arith.addf %297, %296 : vector<8x96xf32>
    %299 = arith.divf %297, %298 : vector<8x96xf32>
    %300 = vector.extract_strided_slice %293 {offsets = [0, 96], sizes = [8, 32], strides = [1, 1]} : vector<8x128xf32> to vector<8x32xf32>
    %301 = math.tanh %300 : vector<8x32xf32>
    %302 = vector.extract_strided_slice %299 {offsets = [0, 0], sizes = [8, 32], strides = [1, 1]} : vector<8x96xf32> to vector<8x32xf32>
    %303 = vector.extract_strided_slice %299 {offsets = [0, 32], sizes = [8, 32], strides = [1, 1]} : vector<8x96xf32> to vector<8x32xf32>
    %304 = vector.extract_strided_slice %299 {offsets = [0, 64], sizes = [8, 32], strides = [1, 1]} : vector<8x96xf32> to vector<8x32xf32>
    %305 = arith.mulf %303, %269 : vector<8x32xf32>
    %306 = arith.mulf %302, %301 : vector<8x32xf32>
    %307 = arith.addf %305, %306 : vector<8x32xf32>
    %308 = math.tanh %307 : vector<8x32xf32>
    %309 = arith.mulf %304, %308 : vector<8x32xf32>
    %310 = tpu.concatenate %24, %62, %100, %138, %176, %214, %252, %290 in 0 : vector<8x32xf32>, vector<8x32xf32>, vector<8x32xf32>, vector<8x32xf32>, vector<8x32xf32>, vector<8x32xf32>, vector<8x32xf32>, vector<8x32xf32> -> vector<64x32xf32>
    %311 = tpu.concatenate %309, %271, %233, %195, %157, %119, %81, %43 in 0 : vector<8x32xf32>, vector<8x32xf32>, vector<8x32xf32>, vector<8x32xf32>, vector<8x32xf32>, vector<8x32xf32>, vector<8x32xf32>, vector<8x32xf32> -> vector<64x32xf32>
    %312 = tpu.concatenate %310, %311 in 1 : vector<64x32xf32>, vector<64x32xf32> -> vector<64x64xf32>
    %c0_63 = arith.constant 0 : index
    %c0_64 = arith.constant 0 : index
    %313 = vector.load %arg4[%c0_63, %c0_64] : memref<64x128xf32, #tpu.memory_space<vmem>>, vector<64x128xf32>
    %cst_65 = arith.constant dense<0.000000e+00> : vector<64x128xf32>
    %314 = tpu.matmul %312, %313, %cst_65 {dimension_numbers = #tpu.dot_dimension_numbers<[1], [0], [0], [1], [0, 0, 1, 1], [], []>} : vector<64x64xf32>, vector<64x128xf32>, vector<64x128xf32> -> vector<64x128xf32>
    %c0_66 = arith.constant 0 : index
    %c0_67 = arith.constant 0 : index
    %315 = vector.load %arg5[%c0_66, %c0_67] : memref<1x128xf32, #tpu.memory_space<vmem>>, vector<1x128xf32>
    %316 = vector.broadcast %315 : vector<1x128xf32> to vector<64x128xf32>
    %317 = arith.addf %314, %316 : vector<64x128xf32>
    %cst_68 = arith.constant dense<0xFF800000> : vector<64xf32>
    %318 = vector.multi_reduction <maximumf>, %317, %cst_68 [1] : vector<64x128xf32> to vector<64xf32>
    %319 = vector.shape_cast %318 : vector<64xf32> to vector<64x1xf32>
    %320 = vector.broadcast %319 : vector<64x1xf32> to vector<64x128xf32>
    %321 = arith.subf %317, %320 : vector<64x128xf32>
    %322 = math.exp %321 : vector<64x128xf32>
    %cst_69 = arith.constant dense<0.000000e+00> : vector<64xf32>
    %323 = vector.multi_reduction <add>, %322, %cst_69 [1] : vector<64x128xf32> to vector<64xf32>
    %324 = vector.shape_cast %323 : vector<64xf32> to vector<64x1xf32>
    %325 = math.log %324 : vector<64x1xf32>
    %326 = vector.broadcast %325 : vector<64x1xf32> to vector<64x128xf32>
    %327 = arith.subf %321, %326 : vector<64x128xf32>
    %c0_70 = arith.constant 0 : index
    %c0_71 = arith.constant 0 : index
    %328 = vector.load %arg6[%c0_70, %c0_71] : memref<64x128xf32, #tpu.memory_space<vmem>>, vector<64x128xf32>
    tpu.vector_store %arg6[%c0_70, %c0_71], %327 {strides = array<i32>} : memref<64x128xf32, #tpu.memory_space<vmem>>, vector<64x128xf32>,
    return
  }
}

</mosaic_0001>

<bundles_post_ra>
// kernel: tpu_custom_call.1
= control target key start
LH: loop header
LB: loop body
LE: loop exit
PB: predicated region body
PF: predicated region fallthrough
CT: control target
= control target key end

     0   :  { %11 = vsyncpa [#allocation3], 0  ;;  %s3226_s0 = inlined_call_operand.hbm [shape: f32[64,128], index: 0, kind: input, shape index: {}]   ;;  %s3227_s1 = inlined_call_operand.hbm [shape: f32[64,128], index: 1, kind: input, shape index: {}]   ;;  %s3228_s2 = inlined_call_operand.hbm [shape: f32[32,128], index: 2, kind: input, shape index: {}]   ;;  %s3229_s3 = inlined_call_operand.hbm [shape: f32[32,128], index: 3, kind: input, shape index: {}]   ;;  %s3230_s4 = inlined_call_operand.hbm [shape: f32[64,128], index: 4, kind: input, shape index: {}]   ;;  %s3231_s5 = inlined_call_operand.vmem [shape: f32[1,128], index: 5, kind: input, shape index: {}]   ;;  %s3232_s6 = inlined_call_operand.hbm [shape: f32[64,128], index: 6, kind: output, shape index: {}]  }
   0x1   :  { %12 = vsyncpa [#allocation6], 0 }
   0x2   :  { %13 = vsyncpa [#allocation9], 0 }
   0x3   :  { %14 = vsyncpa [#allocation4], 0  ;;  %s2771_s21 = smov [#allocation5]   ;;  %s2772_s23 = smov [#allocation8]  }
   0x4   :  { %s32_s22 = sshll.u32 %s2771_s21, 4  ;;  %s56_s24 = sshll.u32 %s2772_s23, 4  ;;  %s33_s22 = int_to_ptr.vmem [resolvable:$true] %s32_s22  ;;  %s2820_s24 = int_to_ptr.vmem [resolvable:$true] %s56_s24 }
   0x5   :  { %s2631_s27 = scalar_lea.hbm %s3227_s1, 1024 }
   0x6   :  { %p2632_p0 = scmp.ne.s32.totalorder %s3227_s1, %s2631_s27  ;;  %p2635_p1 = scmp.lt.u32.totalorder %s2631_s27, %s3227_s1 }
   0x8   :  { %p2637_p2 = pnand %p2635_p1, %p2632_p0 }
   0xa   :  { %2640 = shalt.err (!%p2637_p2)
}
   0xb   :  { %s2641_s8 = scalar_lea.vmem %s33_s22, 1024  ;;  %p2646_p4 = scmp.lt.s32.totalorder %s33_s22, %s33_s22 }
   0xc   :  { %p2642_p3 = scmp.ne.s32.totalorder %s33_s22, %s2641_s8  ;;  %p2647_p5 = scmp.lt.s32.totalorder %s2641_s8, %s2641_s8 }
   0xe   :  { %p2648_p6 = por %p2647_p5, %p2646_p4 }
  0x10   :  { %p2649_p7 = pnand %p2648_p6, %p2642_p3 }
  0x12   :  { %2652 = shalt.err (!%p2649_p7)
}
  0x13   :  { %s2773_s9 = smov 128   ;;  %s2774_s10 = smov 8  }
  0x14   :  { %38 = dma.hbm_to_vmem [thread:$0]  %s3227_s1, 1024, %s33_s22, [#allocation6], %s2773_s9, %s2773_s9, %s2774_s10  }
  0x15   :  { %s2653_s15 = scalar_lea.hbm %s3229_s3, 512 }
  0x16   :  { %p2654_p8 = scmp.ne.s32.totalorder %s3229_s3, %s2653_s15  ;;  %p2657_p9 = scmp.lt.u32.totalorder %s2653_s15, %s3229_s3 }
  0x18   :  { %p2659_p10 = pnand %p2657_p9, %p2654_p8 }
  0x1a   :  { %2662 = shalt.err (!%p2659_p10)
}
  0x1b   :  { %s2663_s20 = scalar_lea.vmem %s2820_s24, 512  ;;  %p2668_p12 = scmp.lt.s32.totalorder %s2820_s24, %s2820_s24 }
  0x1c   :  { %p2664_p11 = scmp.ne.s32.totalorder %s2820_s24, %s2663_s20  ;;  %p2669_p13 = scmp.lt.s32.totalorder %s2663_s20, %s2663_s20 }
  0x1e   :  { %p2670_p0 = por %p2669_p13, %p2668_p12 }
  0x20   :  { %p2671_p1 = pnand %p2670_p0, %p2664_p11 }
  0x22   :  { %2674 = shalt.err (!%p2671_p1)
}
  0x23   :  { %62 = dma.hbm_to_vmem [thread:$0]  %s3229_s3, 512, %s2820_s24, [#allocation9], %s2773_s9, %s2773_s9, %s2774_s10  }
  0x24   :  { %s2775_s22 = smov [#allocation2]   ;;  %s2776_s25 = smov [#allocation7]  }
  0x25   :  { %s20_s23 = sshll.u32 %s2775_s22, 4  ;;  %s44_s26 = sshll.u32 %s2776_s25, 4  ;;  %s21_s23 = int_to_ptr.vmem [resolvable:$true] %s20_s23  ;;  %s2857_s26 = int_to_ptr.vmem [resolvable:$true] %s44_s26 }
  0x26   :  { %s2675_s29 = scalar_lea.hbm %s3226_s0, 1024 }
  0x27   :  { %p2676_p2 = scmp.ne.s32.totalorder %s3226_s0, %s2675_s29  ;;  %p2679_p3 = scmp.lt.u32.totalorder %s2675_s29, %s3226_s0 }
  0x29   :  { %p2681_p4 = pnand %p2679_p3, %p2676_p2 }
  0x2b   :  { %2684 = shalt.err (!%p2681_p4)
}
  0x2c   :  { %s2685_s3 = scalar_lea.vmem %s21_s23, 1024  ;;  %p2690_p6 = scmp.lt.s32.totalorder %s21_s23, %s21_s23 }
  0x2d   :  { %p2686_p5 = scmp.ne.s32.totalorder %s21_s23, %s2685_s3  ;;  %p2691_p7 = scmp.lt.s32.totalorder %s2685_s3, %s2685_s3 }
  0x2f   :  { %p2692_p8 = por %p2691_p7, %p2690_p6 }
  0x31   :  { %p2693_p9 = pnand %p2692_p8, %p2686_p5 }
  0x33   :  { %2696 = shalt.err (!%p2693_p9)
}
  0x34   :  { %26 = dma.hbm_to_vmem [thread:$0]  %s3226_s0, 1024, %s21_s23, [#allocation3], %s2773_s9, %s2773_s9, %s2774_s10  }
  0x35   :  { %s2697_s15 = scalar_lea.hbm %s3228_s2, 512 }
  0x36   :  { %p2698_p10 = scmp.ne.s32.totalorder %s3228_s2, %s2697_s15  ;;  %p2701_p11 = scmp.lt.u32.totalorder %s2697_s15, %s3228_s2 }
  0x38   :  { %p2703_p12 = pnand %p2701_p11, %p2698_p10 }
  0x3a   :  { %2706 = shalt.err (!%p2703_p12)
}
  0x3b   :  { %s2707_s20 = scalar_lea.vmem %s2857_s26, 512  ;;  %p2712_p0 = scmp.lt.s32.totalorder %s2857_s26, %s2857_s26 }
  0x3c   :  { %p2708_p13 = scmp.ne.s32.totalorder %s2857_s26, %s2707_s20  ;;  %p2713_p1 = scmp.lt.s32.totalorder %s2707_s20, %s2707_s20 }
  0x3e   :  { %p2714_p2 = por %p2713_p1, %p2712_p0 }
  0x40   :  { %p2715_p3 = pnand %p2714_p2, %p2708_p13 }
  0x42   :  { %2718 = shalt.err (!%p2715_p3)
}
  0x43   :  { %50 = dma.hbm_to_vmem [thread:$0]  %s3228_s2, 512, %s2857_s26, [#allocation6], %s2773_s9, %s2773_s9, %s2774_s10  }
  0x44   :  { %s2777_s21 = smov [#allocation10]   ;;  %s2719_s27 = scalar_lea.hbm %s3230_s4, 1024 }
  0x45   :  { %s68_s22 = sshll.u32 %s2777_s21, 4  ;;  %p2720_p4 = scmp.ne.s32.totalorder %s3230_s4, %s2719_s27  ;;  %s69_s22 = int_to_ptr.vmem [resolvable:$true] %s68_s22 }
  0x46   :  { %p2723_p5 = scmp.lt.u32.totalorder %s2719_s27, %s3230_s4 }
  0x48   :  { %p2725_p6 = pnand %p2723_p5, %p2720_p4 }
  0x4a   :  { %2728 = shalt.err (!%p2725_p6)
}
  0x4b   :  { %s2729_s8 = scalar_lea.vmem %s69_s22, 1024  ;;  %p2734_p8 = scmp.lt.s32.totalorder %s69_s22, %s69_s22 }
  0x4c   :  { %p2730_p7 = scmp.ne.s32.totalorder %s69_s22, %s2729_s8  ;;  %p2735_p9 = scmp.lt.s32.totalorder %s2729_s8, %s2729_s8 }
  0x4e   :  { %p2736_p10 = por %p2735_p9, %p2734_p8 }
  0x50   :  { %p2737_p11 = pnand %p2736_p10, %p2730_p7 }
  0x52   :  { %2740 = shalt.err (!%p2737_p11)
}
  0x53   :  { %74 = dma.hbm_to_vmem [thread:$0]  %s3230_s4, 1024, %s69_s22, [#allocation9], %s2773_s9, %s2773_s9, %s2774_s10  }
  0x54   :  { %2763 = dma.done.wait [#allocation3], 1024  }
  0x55   :  { %2764 = vsyncadd [#allocation3], 4294966272 }
  0x56   :  { %2765 = dma.done.wait [#allocation6], 1536  }
  0x57   :  { %2766 = vsyncadd [#allocation6], 4294965760 }
  0x58   :  { %2767 = dma.done.wait [#allocation9], 1536  }
  0x59   :  { %2768 = vsyncadd [#allocation9], 4294965760  ;;  %v2778_v0 = vmov 0.0|0.0   ;;  %vm2779_vm0 = vmmov 0   ;;  %v2780_v1 = vmov 0.0   ;;  %v92_v2 = vld [vmem:[#allocation7] sm:$0xff] }
  0x5a   :  { %2345 = vmatprep.subr.bf16.mxu1 %v2778_v0  ;;  %2149 = vmatprep.mubr.msk.f32.mxu1 %vm2779_vm0, %v2780_v1  ;;  %v93_v3 = vld [vmem:[#allocation7 + $0x8] sm:$0xff]  ;;  %v94_v4 = vld [vmem:[#allocation7 + $0x10] sm:$0xff]  ;;  %v95_v6 = vld [vmem:[#allocation7 + $0x18] sm:$0xff]  ;;  %s2781_s4 = smov 32   ;;  %s2782_s11 = smov 64   ;;  %vm101_vm1 = vcmask 261120  }
  0x5b   :  { %2369 = vmatprep.subr.bf16.mxu0 %v2778_v0  ;;  %2193 = vmatprep.mubr.msk.f32.mxu0 %vm2779_vm0, %v2780_v1  ;;  %v2915_v5 = vpack.c.bf16 %v93_v3, %v92_v2  ;;  %v2918_v7 = vpack.c.bf16 %v95_v6, %v94_v4  ;;  %v96_v8 = vld [vmem:[#allocation8] sm:$0xff]  ;;  %v97_v9 = vld [vmem:[#allocation8 + $0x8] sm:$0xff]  ;;  %v98_v11 = vld [vmem:[#allocation8 + $0x10] sm:$0xff]  ;;  %s2783_s3 = smov 96   ;;  %vm1769_vm2 = vcmask 523264  }
  0x5c   :  { %v2924_v10 = vpack.c.bf16 %v97_v9, %v96_v8  ;;  %v99_v12 = vld [vmem:[#allocation8 + $0x18] sm:$0xff]  ;;  %v100_v14 = vld [vmem:[#allocation2] sm:$0xff]  ;;  %v296_v50 = vld [vmem:[#allocation2 + $0x8] sm:$0xff] }
  0x5d   :  { %2347 = vmatpush3.bf16.msra.mxu1 %v2915_v5  ;;  %2371 = vmatpush3.bf16.msra.mxu0 %v2915_v5  ;;  %v2931_v13 = vpack.c.bf16 %v99_v12, %v98_v11  ;;  %v200_v18 = vld [vmem:[#allocation5 + $0x38] sm:$0xff]  ;;  %v397_v54 = vld [vmem:[#allocation5 + $0x30] sm:$0xff] }
  0x5e   :  { %2348 = vmatprep.subr.bf16.mxu1 %v2778_v0  ;;  %2372 = vmatprep.subr.bf16.mxu0 %v2778_v0 }
  0x61   :  { %2350 = vmatpush3.bf16.msra.mxu1 %v2918_v7  ;;  %2374 = vmatpush3.bf16.msra.mxu0 %v2918_v7 }
  0x62   :  { %2351 = vmatprep.subr.bf16.mxu1 %v2778_v0  ;;  %2381 = vmatprep.subr.bf16.mxu0 %v2778_v0 }
  0x64   :  { %2150 = vmatmul.mubr.f32.vlgmr.msra.gmra.mrb[0].mxu1 %v2780_v1 }
  0x65   :  { %2353 = vmatpush3.bf16.msra.mxu1 %v2924_v10  ;;  %2160 = vmatprep.mubr.msk.f32.mxu1 %vm2779_vm0, %v2780_v1 }
  0x66   :  { %2354 = vmatprep.subr.bf16.mxu1 %v2778_v0 }
  0x69   :  { %2356 = vmatpush3.bf16.msra.mxu1 %v2931_v13 }
  0x6a   :  { %2357 = vmatprep.subr.bf16.mxu1 %v2778_v0 }
  0x6c   :  { %2161 = vmatmul.mubr.f32.vlgmr.msra.gmra.mrb[2].mxu1 %v2780_v1 }
  0x6d   :  { %2359 = vmatpush3.bf16.msra.mxu1 %v2915_v5  ;;  %2171 = vmatprep.mubr.msk.f32.mxu1 %vm2779_vm0, %v2780_v1 }
  0x6e   :  { %2360 = vmatprep.subr.bf16.mxu1 %v2778_v0 }
  0x71   :  { %2362 = vmatpush3.bf16.msra.mxu1 %v2918_v7 }
  0x72   :  { %2363 = vmatprep.subr.bf16.mxu1 %v2778_v0 }
 0x137   :  { %v171_v15 = vpop.f32.mrb[0].mxu1 }
 0x138   :  { %v175_v16 = vadd.f32 %v171_v15, %v100_v14  ;;  %v2151_v17 = vpop.f32.mrb[1].mxu1 }
 0x13a   :  { %2471 = vtanh.f32 %v175_v16  ;;  %v2006_v24 = vmul.f32 -1.442695, %v175_v16 }
 0x13f   :  { %v267_v19 = vpop.f32.mrb[2].mxu1 }
 0x140   :  { %v271_v20 = vadd.f32 %v267_v19, %v200_v18  ;;  %v2162_v21 = vpop.f32.mrb[3].mxu1 }
 0x142   :  { %2473 = vtanh.f32 %v271_v20  ;;  %v2007_v25 = vmul.f32 -1.442695, %v271_v20 }
 0x143   :  { %2475 = vpow2.f32 %v2006_v24 }
 0x144   :  { %v2472_v22 = vpop.eup %2471  ;;  %2477 = vpow2.f32 %v2007_v25 }
 0x145   :  { %185 = vrot.lane.b32.xlu0 %v2472_v22, %s2781_s4 }
 0x14c   :  { %v2474_v23 = vpop.eup %2473 }
 0x14d   :  { %281 = vrot.lane.b32.xlu0 %v2474_v23, %s2781_s4  ;;  %v2476_v26 = vpop.eup %2475 }
 0x14e   :  { %v179_v27 = vadd.f32 1.0, %v2476_v26  ;;  %v2478_v28 = vpop.eup %2477 }
 0x14f   :  { %v275_v29 = vadd.f32 1.0, %v2478_v28  ;;  %v498_v28 = vld [vmem:[#allocation2 + $0x10] sm:$0xff] }
 0x150   :  { %2479 = vrcp.f32 %v179_v27 }
 0x151   :  { %2481 = vrcp.f32 %v275_v29 }
 0x15a   :  { %v2480_v30 = vpop.eup %2479 }
 0x15b   :  { %v2482_v33 = vpop.eup %2481  ;;  %v183_v36 = vmul.f32 0.0, %v2480_v30 }
 0x15c   :  { %v279_v39 = vmul.f32 0.0, %v2482_v33 }
 0x1b7   :  { %v186_v31 = vpop.permute.xlu0 %185 }
 0x1b8   :  { %v188_v32 = vmul.f32 %v2480_v30, %v186_v31 }
 0x1ba   :  { %190 = vrot.lane.b32.xlu1 %v188_v32, %s2781_s4  ;;  %v599_v32 = vld [vmem:[#allocation5 + $0x28] sm:$0xff] }
 0x1bf   :  { %v282_v34 = vpop.permute.xlu0 %281 }
 0x1c0   :  { %v284_v35 = vmul.f32 %v2482_v33, %v282_v34 }
 0x1c2   :  { %286 = vrot.lane.b32.xlu1 %v284_v35, %s2781_s4 }
 0x22c   :  { %v191_v37 = vpop.permute.xlu1 %190 }
 0x22d   :  { %v2949_v38 = vadd.f32 %v191_v37, %v183_v36 }
 0x22f   :  { %2483 = vtanh.f32 %v2949_v38 }
 0x234   :  { %v287_v40 = vpop.permute.xlu1 %286 }
 0x235   :  { %v2952_v41 = vadd.f32 %v287_v40, %v279_v39 }
 0x237   :  { %2485 = vtanh.f32 %v2952_v41 }
 0x239   :  { %v2484_v42 = vpop.eup %2483 }
 0x23a   :  { %196 = vrot.lane.b32.xlu0 %v2484_v42, %s2781_s4 }
 0x241   :  { %v2486_v43 = vpop.eup %2485 }
 0x242   :  { %292 = vrot.lane.b32.xlu1 %v2486_v43, %s2781_s4 }
 0x2ac   :  { %v197_v44 = vpop.permute.xlu0 %196 }
 0x2ad   :  { %v199_v45 = vmul.f32 %v2480_v30, %v197_v44 }
 0x2af   :  { %298 = vrot.lane.b32.xlu0 %v199_v45, %s2782_s11 }
 0x2b4   :  { %v293_v46 = vpop.permute.xlu1 %292 }
 0x2b5   :  { %v2958_v47 = vmul.f32 %v2482_v33, %v293_v46 }
 0x2b7   :  { %399 = vrot.lane.b32.xlu1 %v2958_v47, %s2782_s11 }
 0x321   :  { %v2962_v48 = vpop.permute.xlu0 %298 }
 0x322   :  { %2172 = vmatmul.mubr.msk.f32.vlgmr.msra.gmra.mrb[4].mxu1 %vm101_vm1, %v2962_v48 }
 0x323   :  { %2365 = vmatpush3.bf16.msra.mxu1 %v2924_v10  ;;  %2182 = vmatprep.mubr.msk.f32.mxu1 %vm2779_vm0, %v2780_v1 }
 0x324   :  { %2366 = vmatprep.subr.bf16.mxu1 %v2778_v0 }
 0x327   :  { %2368 = vmatpush3.bf16.msra.mxu1 %v2931_v13 }
 0x328   :  { %2375 = vmatprep.subr.bf16.mxu1 %v2778_v0 }
 0x329   :  { %v400_v49 = vpop.permute.xlu1 %399 }
 0x32a   :  { %2183 = vmatmul.mubr.msk.f32.vlgmr.msra.gmra.mrb[6].mxu1 %vm101_vm1, %v400_v49 }
 0x32b   :  { %2377 = vmatpush3.bf16.msra.mxu1 %v2924_v10  ;;  %2204 = vmatprep.mubr.msk.f32.mxu1 %vm2779_vm0, %v2780_v1 }
 0x32c   :  { %2378 = vmatprep.subr.bf16.mxu1 %v2778_v0 }
 0x32f   :  { %2380 = vmatpush3.bf16.msra.mxu1 %v2931_v13 }
 0x330   :  { %2387 = vmatprep.subr.bf16.mxu1 %v2778_v0 }
 0x3f5   :  { %v368_v51 = vpop.f32.mrb[4].mxu1 }
 0x3f6   :  { %v372_v52 = vadd.f32 %v368_v51, %v296_v50  ;;  %v2173_v53 = vpop.f32.mrb[5].mxu1 }
 0x3f8   :  { %2487 = vtanh.f32 %v372_v52  ;;  %v2009_v60 = vmul.f32 -1.442695, %v372_v52 }
 0x3fd   :  { %v469_v55 = vpop.f32.mrb[6].mxu1 }
 0x3fe   :  { %v473_v56 = vadd.f32 %v469_v55, %v397_v54  ;;  %v2184_v57 = vpop.f32.mrb[7].mxu1 }
 0x400   :  { %2489 = vtanh.f32 %v473_v56  ;;  %v2011_v61 = vmul.f32 -1.442695, %v473_v56 }
 0x401   :  { %2491 = vpow2.f32 %v2009_v60 }
 0x402   :  { %v2488_v58 = vpop.eup %2487  ;;  %2493 = vpow2.f32 %v2011_v61 }
 0x403   :  { %382 = vrot.lane.b32.xlu1 %v2488_v58, %s2781_s4 }
 0x40a   :  { %v2490_v59 = vpop.eup %2489 }
 0x40b   :  { %483 = vrot.lane.b32.xlu0 %v2490_v59, %s2781_s4  ;;  %v2492_v62 = vpop.eup %2491 }
 0x40c   :  { %v376_v63 = vadd.f32 1.0, %v2492_v62  ;;  %v2494_v2 = vpop.eup %2493 }
 0x40d   :  { %v477_v3 = vadd.f32 1.0, %v2494_v2 }
 0x40e   :  { %2495 = vrcp.f32 %v376_v63 }
 0x40f   :  { %2497 = vrcp.f32 %v477_v3 }
 0x418   :  { %v2496_v4 = vpop.eup %2495 }
 0x419   :  { %v2498_v9 = vpop.eup %2497  ;;  %v380_v14 = vmul.f32 %v2496_v4, %v2949_v38 }
 0x41a   :  { %v481_v17 = vmul.f32 %v2498_v9, %v2952_v41 }
 0x475   :  { %v383_v6 = vpop.permute.xlu1 %382 }
 0x476   :  { %v385_v8 = vmul.f32 %v2496_v4, %v383_v6 }
 0x478   :  { %387 = vrot.lane.b32.xlu1 %v385_v8, %s2781_s4 }
 0x47d   :  { %v484_v11 = vpop.permute.xlu0 %483 }
 0x47e   :  { %v486_v12 = vmul.f32 %v2498_v9, %v484_v11  ;;  %v801_v11 = vld [vmem:[#allocation5 + $0x20] sm:$0xff] }
 0x480   :  { %488 = vrot.lane.b32.xlu0 %v486_v12, %s2781_s4 }
 0x4ea   :  { %v388_v15 = vpop.permute.xlu1 %387 }
 0x4eb   :  { %v390_v16 = vadd.f32 %v388_v15, %v380_v14 }
 0x4ed   :  { %2499 = vtanh.f32 %v390_v16 }
 0x4f2   :  { %v489_v18 = vpop.permute.xlu0 %488 }
 0x4f3   :  { %v491_v19 = vadd.f32 %v489_v18, %v481_v17 }
 0x4f5   :  { %2501 = vtanh.f32 %v491_v19 }
 0x4f7   :  { %v2500_v20 = vpop.eup %2499 }
 0x4f8   :  { %393 = vrot.lane.b32.xlu1 %v2500_v20, %s2781_s4 }
 0x4ff   :  { %v2502_v21 = vpop.eup %2501 }
 0x500   :  { %494 = vrot.lane.b32.xlu0 %v2502_v21, %s2781_s4 }
 0x56a   :  { %v394_v22 = vpop.permute.xlu1 %393 }
 0x56b   :  { %v396_v23 = vmul.f32 %v2496_v4, %v394_v22  ;;  %v700_v4 = vld [vmem:[#allocation2 + $0x18] sm:$0xff] }
 0x56d   :  { %500 = vrot.lane.b32.xlu1 %v396_v23, %s2782_s11 }
 0x572   :  { %v495_v24 = vpop.permute.xlu0 %494 }
 0x573   :  { %v2988_v25 = vmul.f32 %v2498_v9, %v495_v24 }
 0x575   :  { %601 = vrot.lane.b32.xlu0 %v2988_v25, %s2782_s11 }
 0x5df   :  { %v2992_v26 = vpop.permute.xlu1 %500 }
 0x5e0   :  { %2194 = vmatmul.mubr.msk.f32.vlgmr.msra.gmra.mrb[0].mxu0 %vm101_vm1, %v2992_v26 }
 0x5e1   :  { %2383 = vmatpush3.bf16.msra.mxu0 %v2915_v5  ;;  %2215 = vmatprep.mubr.msk.f32.mxu0 %vm2779_vm0, %v2780_v1 }
 0x5e2   :  { %2384 = vmatprep.subr.bf16.mxu0 %v2778_v0 }
 0x5e5   :  { %2386 = vmatpush3.bf16.msra.mxu0 %v2918_v7 }
 0x5e6   :  { %2393 = vmatprep.subr.bf16.mxu0 %v2778_v0 }
 0x5e7   :  { %v602_v27 = vpop.permute.xlu0 %601 }
 0x5e8   :  { %2205 = vmatmul.mubr.msk.f32.vlgmr.msra.gmra.mrb[8].mxu1 %vm101_vm1, %v602_v27 }
 0x5e9   :  { %2389 = vmatpush3.bf16.msra.mxu1 %v2924_v10  ;;  %2226 = vmatprep.mubr.msk.f32.mxu1 %vm2779_vm0, %v2780_v1 }
 0x5ea   :  { %2390 = vmatprep.subr.bf16.mxu1 %v2778_v0 }
 0x5ed   :  { %2392 = vmatpush3.bf16.msra.mxu1 %v2931_v13 }
 0x5ee   :  { %2399 = vmatprep.subr.bf16.mxu1 %v2778_v0 }
 0x6b3   :  { %v570_v29 = vpop.f32.mrb[0].mxu0 }
 0x6b4   :  { %v574_v30 = vadd.f32 %v570_v29, %v498_v28  ;;  %v2195_v31 = vpop.f32.mrb[1].mxu0 }
 0x6b6   :  { %2503 = vtanh.f32 %v574_v30  ;;  %v2013_v38 = vmul.f32 -1.442695, %v574_v30 }
 0x6bb   :  { %v671_v33 = vpop.f32.mrb[8].mxu1 }
 0x6bc   :  { %v675_v34 = vadd.f32 %v671_v33, %v599_v32  ;;  %v2206_v35 = vpop.f32.mrb[9].mxu1 }
 0x6be   :  { %2505 = vtanh.f32 %v675_v34  ;;  %v2015_v39 = vmul.f32 -1.442695, %v675_v34 }
 0x6bf   :  { %2507 = vpow2.f32 %v2013_v38 }
 0x6c0   :  { %v2504_v36 = vpop.eup %2503  ;;  %2509 = vpow2.f32 %v2015_v39 }
 0x6c1   :  { %584 = vrot.lane.b32.xlu1 %v2504_v36, %s2781_s4 }
 0x6c8   :  { %v2506_v37 = vpop.eup %2505 }
 0x6c9   :  { %685 = vrot.lane.b32.xlu0 %v2506_v37, %s2781_s4  ;;  %v2508_v40 = vpop.eup %2507 }
 0x6ca   :  { %v578_v41 = vadd.f32 1.0, %v2508_v40  ;;  %v2510_v42 = vpop.eup %2509 }
 0x6cb   :  { %v679_v43 = vadd.f32 1.0, %v2510_v42 }
 0x6cc   :  { %2511 = vrcp.f32 %v578_v41 }
 0x6cd   :  { %2513 = vrcp.f32 %v679_v43 }
 0x6d6   :  { %v2512_v44 = vpop.eup %2511 }
 0x6d7   :  { %v2514_v49 = vpop.eup %2513  ;;  %v582_v52 = vmul.f32 %v2512_v44, %v390_v16 }
 0x6d8   :  { %v683_v55 = vmul.f32 %v2514_v49, %v491_v19 }
 0x733   :  { %v585_v45 = vpop.permute.xlu1 %584 }
 0x734   :  { %v587_v46 = vmul.f32 %v2512_v44, %v585_v45 }
 0x736   :  { %589 = vrot.lane.b32.xlu1 %v587_v46, %s2781_s4  ;;  %v902_v46 = vld [vmem:[#allocation2 + $0x20] sm:$0xff] }
 0x73b   :  { %v686_v50 = vpop.permute.xlu0 %685 }
 0x73c   :  { %v688_v51 = vmul.f32 %v2514_v49, %v686_v50 }
 0x73e   :  { %690 = vrot.lane.b32.xlu0 %v688_v51, %s2781_s4 }
 0x7a8   :  { %v590_v53 = vpop.permute.xlu1 %589 }
 0x7a9   :  { %v592_v54 = vadd.f32 %v590_v53, %v582_v52  ;;  %v1003_v52 = vld [vmem:[#allocation5 + $0x18] sm:$0xff] }
 0x7ab   :  { %2515 = vtanh.f32 %v592_v54 }
 0x7b0   :  { %v691_v56 = vpop.permute.xlu0 %690 }
 0x7b1   :  { %v693_v57 = vadd.f32 %v691_v56, %v683_v55 }
 0x7b3   :  { %2517 = vtanh.f32 %v693_v57 }
 0x7b5   :  { %v2516_v58 = vpop.eup %2515 }
 0x7b6   :  { %595 = vrot.lane.b32.xlu1 %v2516_v58, %s2781_s4 }
 0x7bd   :  { %v2518_v59 = vpop.eup %2517 }
 0x7be   :  { %696 = vrot.lane.b32.xlu0 %v2518_v59, %s2781_s4 }
 0x828   :  { %v596_v60 = vpop.permute.xlu1 %595 }
 0x829   :  { %v598_v61 = vmul.f32 %v2512_v44, %v596_v60 }
 0x82b   :  { %702 = vrot.lane.b32.xlu1 %v598_v61, %s2782_s11 }
 0x830   :  { %v697_v62 = vpop.permute.xlu0 %696 }
 0x831   :  { %v3016_v63 = vmul.f32 %v2514_v49, %v697_v62 }
 0x833   :  { %803 = vrot.lane.b32.xlu0 %v3016_v63, %s2782_s11 }
 0x89d   :  { %v3020_v2 = vpop.permute.xlu1 %702 }
 0x89e   :  { %2216 = vmatmul.mubr.msk.f32.vlgmr.msra.gmra.mrb[2].mxu0 %vm101_vm1, %v3020_v2 }
 0x89f   :  { %2395 = vmatpush3.bf16.msra.mxu0 %v2915_v5  ;;  %2237 = vmatprep.mubr.msk.f32.mxu0 %vm2779_vm0, %v2780_v1 }
 0x8a0   :  { %2396 = vmatprep.subr.bf16.mxu0 %v2778_v0 }
 0x8a3   :  { %2398 = vmatpush3.bf16.msra.mxu0 %v2918_v7 }
 0x8a4   :  { %2405 = vmatprep.subr.bf16.mxu0 %v2778_v0 }
 0x8a5   :  { %v804_v3 = vpop.permute.xlu0 %803 }
 0x8a6   :  { %2227 = vmatmul.mubr.msk.f32.vlgmr.msra.gmra.mrb[10].mxu1 %vm101_vm1, %v804_v3 }
 0x8a7   :  { %2401 = vmatpush3.bf16.msra.mxu1 %v2924_v10  ;;  %2248 = vmatprep.mubr.msk.f32.mxu1 %vm2779_vm0, %v2780_v1 }
 0x8a8   :  { %2402 = vmatprep.subr.bf16.mxu1 %v2778_v0 }
 0x8ab   :  { %2404 = vmatpush3.bf16.msra.mxu1 %v2931_v13 }
 0x8ac   :  { %2411 = vmatprep.subr.bf16.mxu1 %v2778_v0 }
 0x971   :  { %v772_v6 = vpop.f32.mrb[2].mxu0 }
 0x972   :  { %v776_v8 = vadd.f32 %v772_v6, %v700_v4  ;;  %v2217_v9 = vpop.f32.mrb[3].mxu0 }
 0x974   :  { %2519 = vtanh.f32 %v776_v8  ;;  %v2017_v18 = vmul.f32 -1.442695, %v776_v8 }
 0x979   :  { %v873_v12 = vpop.f32.mrb[10].mxu1 }
 0x97a   :  { %v877_v14 = vadd.f32 %v873_v12, %v801_v11  ;;  %v2228_v15 = vpop.f32.mrb[11].mxu1 }
 0x97c   :  { %2521 = vtanh.f32 %v877_v14  ;;  %v2019_v19 = vmul.f32 -1.442695, %v877_v14 }
 0x97d   :  { %2523 = vpow2.f32 %v2017_v18 }
 0x97e   :  { %v2520_v16 = vpop.eup %2519  ;;  %2525 = vpow2.f32 %v2019_v19 }
 0x97f   :  { %786 = vrot.lane.b32.xlu1 %v2520_v16, %s2781_s4 }
 0x986   :  { %v2522_v17 = vpop.eup %2521 }
 0x987   :  { %887 = vrot.lane.b32.xlu0 %v2522_v17, %s2781_s4  ;;  %v2524_v20 = vpop.eup %2523 }
 0x988   :  { %v780_v21 = vadd.f32 1.0, %v2524_v20  ;;  %v2526_v22 = vpop.eup %2525 }
 0x989   :  { %v881_v23 = vadd.f32 1.0, %v2526_v22 }
 0x98a   :  { %2527 = vrcp.f32 %v780_v21 }
 0x98b   :  { %2529 = vrcp.f32 %v881_v23 }
 0x994   :  { %v2528_v24 = vpop.eup %2527 }
 0x995   :  { %v2530_v29 = vpop.eup %2529  ;;  %v784_v32 = vmul.f32 %v2528_v24, %v592_v54 }
 0x996   :  { %v885_v35 = vmul.f32 %v2530_v29, %v693_v57 }
 0x9f1   :  { %v787_v27 = vpop.permute.xlu1 %786 }
 0x9f2   :  { %v789_v28 = vmul.f32 %v2528_v24, %v787_v27 }
 0x9f4   :  { %791 = vrot.lane.b32.xlu1 %v789_v28, %s2781_s4 }
 0x9f9   :  { %v888_v30 = vpop.permute.xlu0 %887 }
 0x9fa   :  { %v890_v31 = vmul.f32 %v2530_v29, %v888_v30  ;;  %v1104_v30 = vld [vmem:[#allocation2 + $0x28] sm:$0xff] }
 0x9fc   :  { %892 = vrot.lane.b32.xlu0 %v890_v31, %s2781_s4 }
 0xa66   :  { %v792_v33 = vpop.permute.xlu1 %791 }
 0xa67   :  { %v794_v34 = vadd.f32 %v792_v33, %v784_v32 }
 0xa69   :  { %2531 = vtanh.f32 %v794_v34 }
 0xa6e   :  { %v893_v36 = vpop.permute.xlu0 %892 }
 0xa6f   :  { %v895_v37 = vadd.f32 %v893_v36, %v885_v35 }
 0xa71   :  { %2533 = vtanh.f32 %v895_v37 }
 0xa73   :  { %v2532_v38 = vpop.eup %2531 }
 0xa74   :  { %797 = vrot.lane.b32.xlu1 %v2532_v38, %s2781_s4 }
 0xa7b   :  { %v2534_v39 = vpop.eup %2533 }
 0xa7c   :  { %898 = vrot.lane.b32.xlu0 %v2534_v39, %s2781_s4 }
 0xae6   :  { %v798_v40 = vpop.permute.xlu1 %797 }
 0xae7   :  { %v800_v41 = vmul.f32 %v2528_v24, %v798_v40 }
 0xae9   :  { %904 = vrot.lane.b32.xlu1 %v800_v41, %s2782_s11 }
 0xaee   :  { %v899_v42 = vpop.permute.xlu0 %898 }
 0xaef   :  { %v3044_v43 = vmul.f32 %v2530_v29, %v899_v42 }
 0xaf1   :  { %1005 = vrot.lane.b32.xlu0 %v3044_v43, %s2782_s11 }
 0xb5b   :  { %v3048_v44 = vpop.permute.xlu1 %904 }
 0xb5c   :  { %2238 = vmatmul.mubr.msk.f32.vlgmr.msra.gmra.mrb[4].mxu0 %vm101_vm1, %v3048_v44 }
 0xb5d   :  { %2407 = vmatpush3.bf16.msra.mxu0 %v2915_v5  ;;  %2259 = vmatprep.mubr.msk.f32.mxu0 %vm2779_vm0, %v2780_v1 }
 0xb5e   :  { %2408 = vmatprep.subr.bf16.mxu0 %v2778_v0 }
 0xb61   :  { %2410 = vmatpush3.bf16.msra.mxu0 %v2918_v7 }
 0xb62   :  { %2417 = vmatprep.subr.bf16.mxu0 %v2778_v0 }
 0xb63   :  { %v1006_v45 = vpop.permute.xlu0 %1005 }
 0xb64   :  { %2249 = vmatmul.mubr.msk.f32.vlgmr.msra.gmra.mrb[12].mxu1 %vm101_vm1, %v1006_v45 }
 0xb65   :  { %2413 = vmatpush3.bf16.msra.mxu1 %v2924_v10  ;;  %2270 = vmatprep.mubr.msk.f32.mxu1 %vm2779_vm0, %v2780_v1 }
 0xb66   :  { %2414 = vmatprep.subr.bf16.mxu1 %v2778_v0 }
 0xb69   :  { %2416 = vmatpush3.bf16.msra.mxu1 %v2931_v13 }
 0xb6a   :  { %2423 = vmatprep.subr.bf16.mxu1 %v2778_v0 }
 0xc2f   :  { %v974_v49 = vpop.f32.mrb[4].mxu0 }
 0xc30   :  { %v978_v50 = vadd.f32 %v974_v49, %v902_v46  ;;  %v2239_v51 = vpop.f32.mrb[5].mxu0 }
 0xc32   :  { %2535 = vtanh.f32 %v978_v50  ;;  %v2021_v58 = vmul.f32 -1.442695, %v978_v50 }
 0xc37   :  { %v1075_v53 = vpop.f32.mrb[12].mxu1 }
 0xc38   :  { %v1079_v54 = vadd.f32 %v1075_v53, %v1003_v52  ;;  %v2250_v55 = vpop.f32.mrb[13].mxu1 }
 0xc3a   :  { %2537 = vtanh.f32 %v1079_v54  ;;  %v2023_v59 = vmul.f32 -1.442695, %v1079_v54 }
 0xc3b   :  { %2539 = vpow2.f32 %v2021_v58 }
 0xc3c   :  { %v2536_v56 = vpop.eup %2535  ;;  %2541 = vpow2.f32 %v2023_v59 }
 0xc3d   :  { %988 = vrot.lane.b32.xlu1 %v2536_v56, %s2781_s4 }
 0xc44   :  { %v2538_v57 = vpop.eup %2537 }
 0xc45   :  { %1089 = vrot.lane.b32.xlu0 %v2538_v57, %s2781_s4  ;;  %v2540_v60 = vpop.eup %2539 }
 0xc46   :  { %v982_v61 = vadd.f32 1.0, %v2540_v60  ;;  %v2542_v62 = vpop.eup %2541 }
 0xc47   :  { %v1083_v3 = vadd.f32 1.0, %v2542_v62 }
 0xc48   :  { %2543 = vrcp.f32 %v982_v61 }
 0xc49   :  { %2545 = vrcp.f32 %v1083_v3 }
 0xc52   :  { %v2544_v4 = vpop.eup %2543 }
 0xc53   :  { %v2546_v9 = vpop.eup %2545  ;;  %v986_v14 = vmul.f32 %v2544_v4, %v794_v34  ;;  %v1205_v34 = vld [vmem:[#allocation5 + $0x10] sm:$0xff] }
 0xc54   :  { %v1087_v17 = vmul.f32 %v2546_v9, %v895_v37 }
 0xcaf   :  { %v989_v6 = vpop.permute.xlu1 %988 }
 0xcb0   :  { %v991_v8 = vmul.f32 %v2544_v4, %v989_v6 }
 0xcb2   :  { %993 = vrot.lane.b32.xlu1 %v991_v8, %s2781_s4 }
 0xcb7   :  { %v1090_v11 = vpop.permute.xlu0 %1089 }
 0xcb8   :  { %v1092_v12 = vmul.f32 %v2546_v9, %v1090_v11 }
 0xcba   :  { %1094 = vrot.lane.b32.xlu0 %v1092_v12, %s2781_s4 }
 0xd24   :  { %v994_v15 = vpop.permute.xlu1 %993 }
 0xd25   :  { %v996_v16 = vadd.f32 %v994_v15, %v986_v14 }
 0xd27   :  { %2547 = vtanh.f32 %v996_v16 }
 0xd2c   :  { %v1095_v18 = vpop.permute.xlu0 %1094 }
 0xd2d   :  { %v1097_v19 = vadd.f32 %v1095_v18, %v1087_v17  ;;  %v1407_v17 = vld [vmem:[#allocation5 + $0x8] sm:$0xff] }
 0xd2f   :  { %2549 = vtanh.f32 %v1097_v19 }
 0xd31   :  { %v2548_v20 = vpop.eup %2547 }
 0xd32   :  { %999 = vrot.lane.b32.xlu1 %v2548_v20, %s2781_s4 }
 0xd39   :  { %v2550_v21 = vpop.eup %2549 }
 0xd3a   :  { %1100 = vrot.lane.b32.xlu0 %v2550_v21, %s2781_s4 }
 0xda4   :  { %v1000_v22 = vpop.permute.xlu1 %999 }
 0xda5   :  { %v1002_v23 = vmul.f32 %v2544_v4, %v1000_v22 }
 0xda7   :  { %1106 = vrot.lane.b32.xlu1 %v1002_v23, %s2782_s11 }
 0xdac   :  { %v1101_v24 = vpop.permute.xlu0 %1100 }
 0xdad   :  { %v3072_v27 = vmul.f32 %v2546_v9, %v1101_v24 }
 0xdaf   :  { %1207 = vrot.lane.b32.xlu0 %v3072_v27, %s2782_s11 }
 0xe19   :  { %v3076_v28 = vpop.permute.xlu1 %1106 }
 0xe1a   :  { %2260 = vmatmul.mubr.msk.f32.vlgmr.msra.gmra.mrb[6].mxu0 %vm101_vm1, %v3076_v28 }
 0xe1b   :  { %2419 = vmatpush3.bf16.msra.mxu0 %v2915_v5  ;;  %2281 = vmatprep.mubr.msk.f32.mxu0 %vm2779_vm0, %v2780_v1 }
 0xe1c   :  { %2420 = vmatprep.subr.bf16.mxu0 %v2778_v0 }
 0xe1f   :  { %2422 = vmatpush3.bf16.msra.mxu0 %v2918_v7 }
 0xe20   :  { %2429 = vmatprep.subr.bf16.mxu0 %v2778_v0 }
 0xe21   :  { %v1208_v29 = vpop.permute.xlu0 %1207 }
 0xe22   :  { %2271 = vmatmul.mubr.msk.f32.vlgmr.msra.gmra.mrb[14].mxu1 %vm101_vm1, %v1208_v29 }
 0xe23   :  { %2425 = vmatpush3.bf16.msra.mxu1 %v2924_v10  ;;  %2292 = vmatprep.mubr.msk.f32.mxu1 %vm2779_vm0, %v2780_v1 }
 0xe24   :  { %2426 = vmatprep.subr.bf16.mxu1 %v2778_v0 }
 0xe27   :  { %2428 = vmatpush3.bf16.msra.mxu1 %v2931_v13 }
 0xe28   :  { %2435 = vmatprep.subr.bf16.mxu1 %v2778_v0 }
 0xeed   :  { %v1176_v31 = vpop.f32.mrb[6].mxu0 }
 0xeee   :  { %v1180_v32 = vadd.f32 %v1176_v31, %v1104_v30  ;;  %v2261_v33 = vpop.f32.mrb[7].mxu0 }
 0xef0   :  { %2551 = vtanh.f32 %v1180_v32  ;;  %v2025_v40 = vmul.f32 -1.442695, %v1180_v32 }
 0xef5   :  { %v1277_v35 = vpop.f32.mrb[14].mxu1 }
 0xef6   :  { %v1281_v36 = vadd.f32 %v1277_v35, %v1205_v34  ;;  %v2272_v37 = vpop.f32.mrb[15].mxu1 }
 0xef8   :  { %2553 = vtanh.f32 %v1281_v36  ;;  %v2027_v41 = vmul.f32 -1.442695, %v1281_v36 }
 0xef9   :  { %2555 = vpow2.f32 %v2025_v40 }
 0xefa   :  { %v2552_v38 = vpop.eup %2551  ;;  %2557 = vpow2.f32 %v2027_v41 }
 0xefb   :  { %1190 = vrot.lane.b32.xlu1 %v2552_v38, %s2781_s4 }
 0xf02   :  { %v2554_v39 = vpop.eup %2553 }
 0xf03   :  { %1291 = vrot.lane.b32.xlu0 %v2554_v39, %s2781_s4  ;;  %v2556_v42 = vpop.eup %2555 }
 0xf04   :  { %v1184_v45 = vadd.f32 1.0, %v2556_v42  ;;  %v2558_v46 = vpop.eup %2557 }
 0xf05   :  { %v1285_v49 = vadd.f32 1.0, %v2558_v46 }
 0xf06   :  { %2559 = vrcp.f32 %v1184_v45 }
 0xf07   :  { %2561 = vrcp.f32 %v1285_v49 }
 0xf10   :  { %v2560_v50 = vpop.eup %2559 }
 0xf11   :  { %v2562_v53 = vpop.eup %2561  ;;  %v1188_v56 = vmul.f32 %v2560_v50, %v996_v16 }
 0xf12   :  { %v1289_v59 = vmul.f32 %v2562_v53, %v1097_v19 }
 0xf6d   :  { %v1191_v51 = vpop.permute.xlu1 %1190 }
 0xf6e   :  { %v1193_v52 = vmul.f32 %v2560_v50, %v1191_v51 }
 0xf70   :  { %1195 = vrot.lane.b32.xlu1 %v1193_v52, %s2781_s4  ;;  %v1508_v52 = vld [vmem:[#allocation2 + $0x38] sm:$0xff] }
 0xf75   :  { %v1292_v54 = vpop.permute.xlu0 %1291 }
 0xf76   :  { %v1294_v55 = vmul.f32 %v2562_v53, %v1292_v54 }
 0xf78   :  { %1296 = vrot.lane.b32.xlu0 %v1294_v55, %s2781_s4 }
 0xfe2   :  { %v1196_v57 = vpop.permute.xlu1 %1195 }
 0xfe3   :  { %v1198_v58 = vadd.f32 %v1196_v57, %v1188_v56  ;;  %v1609_v56 = vld [vmem:[#allocation5] sm:$0xff] }
 0xfe5   :  { %2563 = vtanh.f32 %v1198_v58 }
 0xfea   :  { %v1297_v60 = vpop.permute.xlu0 %1296 }
 0xfeb   :  { %v1299_v61 = vadd.f32 %v1297_v60, %v1289_v59 }
 0xfed   :  { %2565 = vtanh.f32 %v1299_v61 }
 0xfef   :  { %v2564_v62 = vpop.eup %2563 }
 0xff0   :  { %1201 = vrot.lane.b32.xlu1 %v2564_v62, %s2781_s4 }
 0xff7   :  { %v2566_v3 = vpop.eup %2565 }
 0xff8   :  { %1302 = vrot.lane.b32.xlu0 %v2566_v3, %s2781_s4 }
0x1062   :  { %v1202_v4 = vpop.permute.xlu1 %1201 }
0x1063   :  { %v1204_v6 = vmul.f32 %v2560_v50, %v1202_v4 }
0x1065   :  { %1308 = vrot.lane.b32.xlu1 %v1204_v6, %s2782_s11 }
0x106a   :  { %v1303_v8 = vpop.permute.xlu0 %1302 }
0x106b   :  { %v3100_v9 = vmul.f32 %v2562_v53, %v1303_v8 }
0x106d   :  { %1409 = vrot.lane.b32.xlu0 %v3100_v9, %s2782_s11 }
0x10d7   :  { %v3104_v11 = vpop.permute.xlu1 %1308 }
0x10d8   :  { %2282 = vmatmul.mubr.msk.f32.vlgmr.msra.gmra.mrb[8].mxu0 %vm101_vm1, %v3104_v11 }
0x10d9   :  { %2431 = vmatpush3.bf16.msra.mxu0 %v2915_v5  ;;  %2303 = vmatprep.mubr.msk.f32.mxu0 %vm2779_vm0, %v2780_v1  ;;  %v1306_v5 = vld [vmem:[#allocation2 + $0x30] sm:$0xff] }
0x10da   :  { %2432 = vmatprep.subr.bf16.mxu0 %v2778_v0 }
0x10dd   :  { %2434 = vmatpush3.bf16.msra.mxu0 %v2918_v7 }
0x10df   :  { %v1410_v12 = vpop.permute.xlu0 %1409 }
0x10e0   :  { %2293 = vmatmul.mubr.msk.f32.vlgmr.msra.gmra.mrb[16].mxu1 %vm101_vm1, %v1410_v12 }
0x10e1   :  { %2437 = vmatpush3.bf16.msra.mxu1 %v2924_v10  ;;  %2314 = vmatprep.mubr.msk.f32.mxu1 %vm2779_vm0, %v2780_v1 }
0x10e2   :  { %2438 = vmatprep.subr.bf16.mxu1 %v2778_v0 }
0x10e5   :  { %2440 = vmatpush3.bf16.msra.mxu1 %v2931_v13 }
0x11ab   :  { %v1378_v14 = vpop.f32.mrb[8].mxu0 }
0x11ac   :  { %v1382_v15 = vadd.f32 %v1378_v14, %v1306_v5  ;;  %v2283_v16 = vpop.f32.mrb[9].mxu0 }
0x11ae   :  { %2567 = vtanh.f32 %v1382_v15  ;;  %v2029_v1 = vmul.f32 -1.442695, %v1382_v15 }
0x11b3   :  { %v1479_v18 = vpop.f32.mrb[16].mxu1 }
0x11b4   :  { %v1483_v7 = vadd.f32 %v1479_v18, %v1407_v17  ;;  %v2294_v19 = vpop.f32.mrb[17].mxu1 }
0x11b6   :  { %2569 = vtanh.f32 %v1483_v7  ;;  %v2031_v0 = vmul.f32 -1.442695, %v1483_v7 }
0x11b7   :  { %2571 = vpow2.f32 %v2029_v1 }
0x11b8   :  { %v2568_v20 = vpop.eup %2567  ;;  %2573 = vpow2.f32 %v2031_v0 }
0x11b9   :  { %1392 = vrot.lane.b32.xlu1 %v2568_v20, %s2781_s4 }
0x11c0   :  { %v2570_v10 = vpop.eup %2569 }
0x11c1   :  { %1493 = vrot.lane.b32.xlu0 %v2570_v10, %s2781_s4  ;;  %v2572_v13 = vpop.eup %2571 }
0x11c2   :  { %v1386_v21 = vadd.f32 1.0, %v2572_v13  ;;  %v2574_v22 = vpop.eup %2573 }
0x11c3   :  { %v1487_v23 = vadd.f32 1.0, %v2574_v22  ;;  %v1754_v22 = vld [vmem:[#allocation10] sm:$0xff] }
0x11c4   :  { %2575 = vrcp.f32 %v1386_v21 }
0x11c5   :  { %2577 = vrcp.f32 %v1487_v23  ;;  %v1755_v23 = vld [vmem:[#allocation10 + $0x8] sm:$0xff] }
0x11ce   :  { %v2576_v24 = vpop.eup %2575 }
0x11cf   :  { %v2578_v31 = vpop.eup %2577  ;;  %v1390_v34 = vmul.f32 %v2576_v24, %v1198_v58 }
0x11d0   :  { %v1491_v37 = vmul.f32 %v2578_v31, %v1299_v61 }
0x122b   :  { %v1393_v29 = vpop.permute.xlu1 %1392 }
0x122c   :  { %v1395_v30 = vmul.f32 %v2576_v24, %v1393_v29  ;;  %v2441_v29 = vpack.c.bf16 %v1755_v23, %v1754_v22 }
0x122e   :  { %1397 = vrot.lane.b32.xlu1 %v1395_v30, %s2781_s4  ;;  %v1757_v30 = vld [vmem:[#allocation10 + $0x18] sm:$0xff]  ;;  %2442 = vmatprep.subr.bf16.mxu0 %v2441_v29 }
0x1233   :  { %v1494_v32 = vpop.permute.xlu0 %1493 }
0x1234   :  { %v1496_v33 = vmul.f32 %v2578_v31, %v1494_v32  ;;  %v1758_v32 = vld [vmem:[#allocation10 + $0x20] sm:$0xff] }
0x1236   :  { %1498 = vrot.lane.b32.xlu0 %v1496_v33, %s2781_s4  ;;  %v1759_v33 = vld [vmem:[#allocation10 + $0x28] sm:$0xff] }
0x12a0   :  { %v1398_v35 = vpop.permute.xlu1 %1397 }
0x12a1   :  { %v1400_v36 = vadd.f32 %v1398_v35, %v1390_v34  ;;  %v1760_v34 = vld [vmem:[#allocation10 + $0x30] sm:$0xff]  ;;  %v2449_v35 = vpack.c.bf16 %v1759_v33, %v1758_v32 }
0x12a3   :  { %2579 = vtanh.f32 %v1400_v36 }
0x12a8   :  { %v1499_v38 = vpop.permute.xlu0 %1498 }
0x12a9   :  { %v1501_v39 = vadd.f32 %v1499_v38, %v1491_v37 }
0x12ab   :  { %2581 = vtanh.f32 %v1501_v39 }
0x12ad   :  { %v2580_v40 = vpop.eup %2579 }
0x12ae   :  { %1403 = vrot.lane.b32.xlu1 %v2580_v40, %s2781_s4 }
0x12b5   :  { %v2582_v41 = vpop.eup %2581 }
0x12b6   :  { %1504 = vrot.lane.b32.xlu0 %v2582_v41, %s2781_s4 }
0x1320   :  { %v1404_v42 = vpop.permute.xlu1 %1403 }
0x1321   :  { %v1406_v45 = vmul.f32 %v2576_v24, %v1404_v42  ;;  %v1756_v24 = vld [vmem:[#allocation10 + $0x10] sm:$0xff] }
0x1323   :  { %1510 = vrot.lane.b32.xlu1 %v1406_v45, %s2782_s11 }
0x1328   :  { %v1505_v46 = vpop.permute.xlu0 %1504 }
0x1329   :  { %v1507_v49 = vmul.f32 %v2578_v31, %v1505_v46  ;;  %v2445_v31 = vpack.c.bf16 %v1757_v30, %v1756_v24 }
0x132b   :  { %1611 = vrot.lane.b32.xlu0 %v1507_v49, %s2782_s11 }
0x1395   :  { %v3127_v50 = vpop.permute.xlu1 %1510 }
0x1396   :  { %2304 = vmatmul.mubr.msk.f32.vlgmr.msra.gmra.mrb[10].mxu0 %vm101_vm1, %v3127_v50 }
0x1397   :  { %2444 = vmatpush3.bf16.msra.mxu0 %v2441_v29 }
0x1398   :  { %2446 = vmatprep.subr.bf16.mxu0 %v2445_v31 }
0x139b   :  { %2448 = vmatpush3.bf16.msra.mxu0 %v2445_v31 }
0x139c   :  { %2450 = vmatprep.subr.bf16.mxu0 %v2449_v35 }
0x139d   :  { %v1612_v51 = vpop.permute.xlu0 %1611 }
0x139e   :  { %2315 = vmatmul.mubr.msk.f32.vlgmr.msra.gmra.mrb[18].mxu1 %vm101_vm1, %v1612_v51 }
0x139f   :  { %2452 = vmatpush3.bf16.msra.mxu0 %v2449_v35 }
0x1469   :  { %v1580_v53 = vpop.f32.mrb[10].mxu0 }
0x146a   :  { %v1584_v54 = vadd.f32 %v1580_v53, %v1508_v52  ;;  %v2305_v55 = vpop.f32.mrb[11].mxu0 }
0x146c   :  { %2583 = vtanh.f32 %v1584_v54  ;;  %v2033_v62 = vmul.f32 -1.442695, %v1584_v54 }
0x1471   :  { %v1681_v57 = vpop.f32.mrb[18].mxu1 }
0x1472   :  { %v1685_v58 = vadd.f32 %v1681_v57, %v1609_v56  ;;  %v2316_v59 = vpop.f32.mrb[19].mxu1 }
0x1474   :  { %2585 = vtanh.f32 %v1685_v58  ;;  %v2035_v3 = vmul.f32 -1.442695, %v1685_v58 }
0x1475   :  { %2587 = vpow2.f32 %v2033_v62 }
0x1476   :  { %v2584_v60 = vpop.eup %2583  ;;  %2589 = vpow2.f32 %v2035_v3 }
0x1477   :  { %1594 = vrot.lane.b32.xlu1 %v2584_v60, %s2781_s4 }
0x147e   :  { %v2586_v61 = vpop.eup %2585 }
0x147f   :  { %1695 = vrot.lane.b32.xlu0 %v2586_v61, %s2781_s4  ;;  %v2588_v4 = vpop.eup %2587 }
0x1480   :  { %v1588_v6 = vadd.f32 1.0, %v2588_v4  ;;  %v2590_v8 = vpop.eup %2589 }
0x1481   :  { %v1689_v12 = vadd.f32 1.0, %v2590_v8 }
0x1482   :  { %2591 = vrcp.f32 %v1588_v6 }
0x1483   :  { %2593 = vrcp.f32 %v1689_v12 }
0x148c   :  { %v2592_v5 = vpop.eup %2591 }
0x148d   :  { %v2594_v16 = vpop.eup %2593  ;;  %v1592_v7 = vmul.f32 %v2592_v5, %v1400_v36 }
0x148e   :  { %v1693_v10 = vmul.f32 %v2594_v16, %v1501_v39 }
0x14e9   :  { %v1595_v14 = vpop.permute.xlu1 %1594 }
0x14ea   :  { %v1597_v15 = vmul.f32 %v2592_v5, %v1595_v14 }
0x14ec   :  { %1599 = vrot.lane.b32.xlu1 %v1597_v15, %s2781_s4 }
0x14f1   :  { %v1696_v17 = vpop.permute.xlu0 %1695 }
0x14f2   :  { %v1698_v18 = vmul.f32 %v2594_v16, %v1696_v17 }
0x14f4   :  { %1700 = vrot.lane.b32.xlu0 %v1698_v18, %s2781_s4 }
0x155e   :  { %v1600_v19 = vpop.permute.xlu1 %1599 }
0x155f   :  { %v1602_v20 = vadd.f32 %v1600_v19, %v1592_v7 }
0x1561   :  { %2595 = vtanh.f32 %v1602_v20 }
0x1566   :  { %v1701_v1 = vpop.permute.xlu0 %1700 }
0x1567   :  { %v1703_v0 = vadd.f32 %v1701_v1, %v1693_v10 }
0x1569   :  { %2597 = vtanh.f32 %v1703_v0 }
0x156b   :  { %v2596_v13 = vpop.eup %2595 }
0x156c   :  { %1605 = vrot.lane.b32.xlu1 %v2596_v13, %s2781_s4 }
0x1570   :  { %1724 = vrot.lane.b32.xlu1 %v1507_v49, %s2783_s3 }
0x1573   :  { %v2598_v21 = vpop.eup %2597 }
0x1574   :  { %1728 = vrot.lane.b32.xlu1 %v3072_v27, %s2783_s3  ;;  %1706 = vrot.lane.b32.xlu0 %v2598_v21, %s2781_s4  ;;  %v1761_v27 = vld [vmem:[#allocation10 + $0x38] sm:$0xff] }
0x1575   :  { %v2453_v36 = vpack.c.bf16 %v1761_v27, %v1760_v34 }
0x1577   :  { %2454 = vmatprep.subr.bf16.mxu0 %v2453_v36 }
0x1578   :  { %1732 = vrot.lane.b32.xlu1 %v3016_v63, %s2783_s3  ;;  %2456 = vmatpush3.bf16.msra.mxu0 %v2453_v36 }
0x15de   :  { %v1606_v63 = vpop.permute.xlu1 %1605 }
0x15df   :  { %v1608_v37 = vmul.f32 %v2592_v5, %v1606_v63 }
0x15e1   :  { %1711 = vrot.lane.b32.xlu1 %v1608_v37, %s2782_s11 }
0x15e2   :  { %v1725_v40 = vpop.permute.xlu1 %1724 }
0x15e3   :  { %v1747_v46 = vsel %vm101_vm1, %v2992_v26, %v1725_v40 }
0x15e6   :  { %v1707_v38 = vpop.permute.xlu0 %1706  ;;  %v1729_v42 = vpop.permute.xlu1 %1728 }
0x15e7   :  { %v1709_v39 = vmul.f32 %v2594_v16, %v1707_v38 }
0x15e9   :  { %1722 = vrot.lane.b32.xlu0 %v1709_v39, %s2783_s3 }
0x15ed   :  { %1726 = vrot.lane.b32.xlu0 %v3100_v9, %s2783_s3  ;;  %v1733_v9 = vpop.permute.xlu1 %1732 }
0x15ee   :  { %v1751_v49 = vsel %vm101_vm1, %v3104_v11, %v1733_v9 }
0x15f1   :  { %1730 = vrot.lane.b32.xlu0 %v3044_v43, %s2783_s3 }
0x15f5   :  { %1734 = vrot.lane.b32.xlu0 %v2988_v25, %s2783_s3 }
0x15f9   :  { %1736 = vrot.lane.b32.xlu0 %v2958_v47, %s2783_s3  ;;  %v1749_v47 = vsel %vm101_vm1, %v3048_v44, %v1729_v42 }
0x1653   :  { %v1712_v51 = vpop.permute.xlu1 %1711 }
0x165b   :  { %v1723_v41 = vpop.permute.xlu0 %1722 }
0x165c   :  { %v1746_v45 = vsel %vm101_vm1, %v2962_v48, %v1723_v41 }
0x165d   :  { %2333 = vmatprep.mubr.msk.f32.mxu0 %vm1769_vm2, %v1746_v45 }
0x165e   :  { %2334 = vmatmul.mubr.msk.f32.vlgmr.msra.gmra.mrb[12].mxu0 %vm1769_vm2, %v1747_v46 }
0x165f   :  { %v1727_v43 = vpop.permute.xlu0 %1726 }
0x1660   :  { %v1748_v25 = vsel %vm101_vm1, %v3020_v2, %v1727_v43 }
0x1661   :  { %2336 = vmatprep.mubr.msk.f32.mxu0 %vm1769_vm2, %v1748_v25 }
0x1662   :  { %2337 = vmatmul.mubr.msk.f32.gmra.mrb[14].mxu0 %vm1769_vm2, %v1749_v47 }
0x1663   :  { %v1731_v48 = vpop.permute.xlu0 %1730 }
0x1664   :  { %v1750_v26 = vsel %vm101_vm1, %v3076_v28, %v1731_v48  ;;  %v2036_v28 = vld [vmem:[%s3231_s5] ss:$0 sm:$0xff]  ;;  %s2784_s5 = smov [#allocation11]  }
0x1665   :  { %2339 = vmatprep.mubr.msk.f32.mxu0 %vm1769_vm2, %v1750_v26  ;;  %s1992_s13 = sshll.u32 %s2784_s5, 4  ;;  %s1993_s13 = int_to_ptr.vmem [resolvable:$true] %s1992_s13 }
0x1666   :  { %2340 = vmatmul.mubr.msk.f32.gmra.mrb[16].mxu0 %vm1769_vm2, %v1751_v49  ;;  %s2741_s14 = scalar_lea.vmem %s1993_s13, 1024  ;;  %p2746_p13 = scmp.lt.s32.totalorder %s1993_s13, %s1993_s13 }
0x1667   :  { %v1735_v2 = vpop.permute.xlu0 %1734  ;;  %p2742_p12 = scmp.ne.s32.totalorder %s1993_s13, %s2741_s14  ;;  %p2747_p0 = scmp.lt.s32.totalorder %s2741_s14, %s2741_s14 }
0x1668   :  { %v1752_v44 = vsel %vm101_vm1, %v3127_v50, %v1735_v2 }
0x1669   :  { %2342 = vmatprep.mubr.msk.f32.mxu0 %vm1769_vm2, %v1752_v44  ;;  %p2748_p1 = por %p2747_p0, %p2746_p13 }
0x166b   :  { %v1737_v52 = vpop.permute.xlu0 %1736  ;;  %p2749_p2 = pnand %p2748_p1, %p2742_p12 }
0x166c   :  { %v1753_v53 = vsel %vm101_vm1, %v1712_v51, %v1737_v52 }
0x166d   :  { %2343 = vmatmul.mubr.msk.f32.gmra.mrb[18].mxu0 %vm1769_vm2, %v1753_v53 }
0x1731   :  { %v2335_v11 = vpop.f32.mrb[12].mxu0 }
0x1732   :  { %v1866_v54 = vadd.f32 %v2335_v11, %v2036_v28  ;;  %v1860_v55 = vpop.f32.mrb[13].mxu0 }
0x1733   :  { %v1861_v56 = vadd.f32 %v2036_v28, %v1860_v55 }
0x1734   :  { %1901 = vmax.xlane.f32.xlu0 %v1866_v54 }
0x1735   :  { %1899 = vmax.xlane.f32.xlu1 %v1861_v56  ;;  %v2338_v57 = vpop.f32.mrb[14].mxu0 }
0x1736   :  { %v1876_v50 = vadd.f32 %v2338_v57, %v2036_v28  ;;  %v1870_v58 = vpop.f32.mrb[15].mxu0 }
0x1737   :  { %v1871_v59 = vadd.f32 %v2036_v28, %v1870_v58 }
0x1739   :  { %1905 = vmax.xlane.f32.xlu1 %v1876_v50  ;;  %1903 = vmax.xlane.f32.xlu0 %v1871_v59  ;;  %v2341_v60 = vpop.f32.mrb[16].mxu0 }
0x173a   :  { %v1886_v61 = vadd.f32 %v2341_v60, %v2036_v28  ;;  %v1880_v62 = vpop.f32.mrb[17].mxu0 }
0x173b   :  { %v1881_v3 = vadd.f32 %v2036_v28, %v1880_v62 }
0x173d   :  { %1909 = vmax.xlane.f32.xlu1 %v1886_v61  ;;  %1907 = vmax.xlane.f32.xlu0 %v1881_v3 }
0x1740   :  { %v2344_v4 = vpop.f32.mrb[18].mxu0 }
0x1741   :  { %v1896_v6 = vadd.f32 %v2344_v4, %v2036_v28  ;;  %v1890_v8 = vpop.f32.mrb[19].mxu0 }
0x1742   :  { %v1891_v12 = vadd.f32 %v2036_v28, %v1890_v8 }
0x1743   :  { %1913 = vmax.xlane.f32.xlu1 %v1896_v6 }
0x1744   :  { %1911 = vmax.xlane.f32.xlu0 %v1891_v12 }
0x17c1   :  { %v1902_v5 = vpop.xlane.xlu0 %1901 }
0x17c2   :  { %v3179_v14 = vsub.f32 %v1866_v54, %v1902_v5  ;;  %v1900_v15 = vpop.xlane.xlu1 %1899 }
0x17c3   :  { %v3181_v16 = vsub.f32 %v1861_v56, %v1900_v15 }
0x17c4   :  { %v1925_v17 = vmul.f32 1.442695, %v3179_v14 }
0x17c5   :  { %v1923_v18 = vmul.f32 1.442695, %v3181_v16 }
0x17c6   :  { %2599 = vpow2.f32 %v1925_v17  ;;  %v1906_v7 = vpop.xlane.xlu1 %1905  ;;  %v1904_v19 = vpop.xlane.xlu0 %1903 }
0x17c7   :  { %2601 = vpow2.f32 %v1923_v18  ;;  %v3185_v20 = vsub.f32 %v1876_v50, %v1906_v7  ;;  %v3187_v10 = vsub.f32 %v1871_v59, %v1904_v19 }
0x17c9   :  { %v1929_v1 = vmul.f32 1.442695, %v3185_v20  ;;  %v1927_v0 = vmul.f32 1.442695, %v3187_v10 }
0x17ca   :  { %v1910_v13 = vpop.xlane.xlu1 %1909  ;;  %v1908_v21 = vpop.xlane.xlu0 %1907 }
0x17cb   :  { %2603 = vpow2.f32 %v1929_v1  ;;  %v3191_v22 = vsub.f32 %v1886_v61, %v1910_v13  ;;  %v3193_v23 = vsub.f32 %v1881_v3, %v1908_v21 }
0x17cc   :  { %2605 = vpow2.f32 %v1927_v0 }
0x17cd   :  { %v1933_v24 = vmul.f32 1.442695, %v3191_v22  ;;  %v1931_v29 = vmul.f32 1.442695, %v3193_v23 }
0x17cf   :  { %2607 = vpow2.f32 %v1933_v24 }
0x17d0   :  { %v2600_v30 = vpop.eup %2599  ;;  %2609 = vpow2.f32 %v1931_v29  ;;  %v1914_v31 = vpop.xlane.xlu1 %1913 }
0x17d1   :  { %v2602_v32 = vpop.eup %2601  ;;  %v3197_v33 = vsub.f32 %v1896_v6, %v1914_v31  ;;  %1941 = vadd.xlane.f32.xlu1 %v2600_v30  ;;  %v1912_v34 = vpop.xlane.xlu0 %1911 }
0x17d2   :  { %v3199_v35 = vsub.f32 %v1891_v12, %v1912_v34  ;;  %1939 = vadd.xlane.f32.xlu0 %v2602_v32 }
0x17d3   :  { %v1937_v27 = vmul.f32 1.442695, %v3197_v33 }
0x17d4   :  { %v1935_v36 = vmul.f32 1.442695, %v3199_v35 }
0x17d5   :  { %v2604_v63 = vpop.eup %2603  ;;  %2611 = vpow2.f32 %v1937_v27 }
0x17d6   :  { %v2606_v37 = vpop.eup %2605  ;;  %2613 = vpow2.f32 %v1935_v36  ;;  %1945 = vadd.xlane.f32.xlu1 %v2604_v63 }
0x17d7   :  { %1943 = vadd.xlane.f32.xlu0 %v2606_v37 }
0x17d9   :  { %v2608_v38 = vpop.eup %2607 }
0x17da   :  { %v2610_v39 = vpop.eup %2609  ;;  %1949 = vadd.xlane.f32.xlu1 %v2608_v38 }
0x17db   :  { %1947 = vadd.xlane.f32.xlu0 %v2610_v39 }
0x17df   :  { %v2612_v40 = vpop.eup %2611 }
0x17e0   :  { %v2614_v41 = vpop.eup %2613  ;;  %1953 = vadd.xlane.f32.xlu1 %v2612_v40 }
0x17e1   :  { %1951 = vadd.xlane.f32.xlu0 %v2614_v41 }
0x185e   :  { %v1942_v42 = vpop.xlane.xlu1 %1941 }
0x185f   :  { %2615 = vlog2.f32 %v1942_v42  ;;  %v1940_v45 = vpop.xlane.xlu0 %1939 }
0x1860   :  { %2617 = vlog2.f32 %v1940_v45 }
0x1863   :  { %v1946_v46 = vpop.xlane.xlu1 %1945 }
0x1864   :  { %2619 = vlog2.f32 %v1946_v46  ;;  %v1944_v43 = vpop.xlane.xlu0 %1943 }
0x1865   :  { %2621 = vlog2.f32 %v1944_v43 }
0x1867   :  { %v1950_v25 = vpop.xlane.xlu1 %1949 }
0x1868   :  { %2623 = vlog2.f32 %v1950_v25  ;;  %v1948_v47 = vpop.xlane.xlu0 %1947 }
0x1869   :  { %v2616_v9 = vpop.eup %2615  ;;  %2625 = vlog2.f32 %v1948_v47 }
0x186a   :  { %v2618_v48 = vpop.eup %2617  ;;  %v1958_v26 = vmul.f32 0.6931472, %v2616_v9 }
0x186b   :  { %v1956_v49 = vmul.f32 0.6931472, %v2618_v48 }
0x186c   :  { %v1972_v2 = vsub.f32 %v3179_v14, %v1958_v26 }
0x186d   :  { %v1971_v44 = vsub.f32 %v3181_v16, %v1956_v49  ;;  %v1954_v51 = vpop.xlane.xlu1 %1953 }
0x186e   :  { %v2620_v52 = vpop.eup %2619  ;;  %1980 = vst [vmem:[#allocation11 + $0x8] sm:$0xff] %v1972_v2  ;;  %2627 = vlog2.f32 %v1954_v51  ;;  %v1952_v53 = vpop.xlane.xlu0 %1951 }
0x186f   :  { %v2622_v28 = vpop.eup %2621  ;;  %1979 = vst [vmem:[#allocation11] sm:$0xff] %v1971_v44  ;;  %v1962_v11 = vmul.f32 0.6931472, %v2620_v52  ;;  %2629 = vlog2.f32 %v1952_v53 }
0x1870   :  { %v1960_v54 = vmul.f32 0.6931472, %v2622_v28 }
0x1871   :  { %v1974_v55 = vsub.f32 %v3185_v20, %v1962_v11 }
0x1872   :  { %v2624_v56 = vpop.eup %2623  ;;  %v1973_v57 = vsub.f32 %v3187_v10, %v1960_v54 }
0x1873   :  { %v2626_v50 = vpop.eup %2625  ;;  %1982 = vst [vmem:[#allocation11 + $0x18] sm:$0xff] %v1974_v55  ;;  %v1966_v58 = vmul.f32 0.6931472, %v2624_v56 }
0x1874   :  { %1981 = vst [vmem:[#allocation11 + $0x10] sm:$0xff] %v1973_v57  ;;  %v1964_v59 = vmul.f32 0.6931472, %v2626_v50 }
0x1875   :  { %v1976_v60 = vsub.f32 %v3191_v22, %v1966_v58 }
0x1876   :  { %v1975_v61 = vsub.f32 %v3193_v23, %v1964_v59 }
0x1877   :  { %1984 = vst [vmem:[#allocation11 + $0x28] sm:$0xff] %v1976_v60 }
0x1878   :  { %v2628_v62 = vpop.eup %2627  ;;  %1983 = vst [vmem:[#allocation11 + $0x20] sm:$0xff] %v1975_v61 }
0x1879   :  { %v2630_v3 = vpop.eup %2629  ;;  %v1970_v4 = vmul.f32 0.6931472, %v2628_v62 }
0x187a   :  { %v1968_v6 = vmul.f32 0.6931472, %v2630_v3 }
0x187b   :  { %v1978_v8 = vsub.f32 %v3197_v33, %v1970_v4 }
0x187c   :  { %v1977_v12 = vsub.f32 %v3199_v35, %v1968_v6 }
0x187d   :  { %1986 = vst [vmem:[#allocation11 + $0x38] sm:$0xff] %v1978_v8 }
0x187e   :  { %1985 = vst [vmem:[#allocation11 + $0x30] sm:$0xff] %v1977_v12 }
0x187f   :  { %2752 = shalt.err (!%p2749_p2)
}
0x1880   :  { %s2753_s17 = scalar_lea.hbm %s3232_s6, 1024 }
0x1881   :  { %p2754_p3 = scmp.ne.s32.totalorder %s3232_s6, %s2753_s17  ;;  %p2757_p4 = scmp.lt.u32.totalorder %s2753_s17, %s3232_s6 }
0x1883   :  { %p2759_p5 = pnand %p2757_p4, %p2754_p3 }
0x1885   :  { %2762 = shalt.err (!%p2759_p5)
}
0x1886   :  { %1998 = dma.vmem_to_hbm [thread:$0]  %s1993_s13, 1024, %s3232_s6, [#allocation4], %s2773_s9, %s2773_s9, %s2774_s10  }
0x1887   :  { %2769 = dma.done.wait [#allocation4], 1024  }
0x1888   :  { %2770 = vsyncadd [#allocation4], 4294966272 }
0x1889   :  { %2002 = vsyncpa [#allocation3], 1 }
0x188a   :  { %2003 = vsyncpa [#allocation6], 1 }
0x188b   :  { %2004 = vsyncpa [#allocation9], 1 }
0x188c   :  { %2005 = vsyncpa [#allocation4], 1 }

</bundles_post_ra>
